<compile_context>
chip_gen: v7x
topology: tpu7x:2x2x1
jax: 0.10.0
libtpu: 0.0.40
codegen_flags: <defaults>
</compile_context>

<pallas_src>
import jax
import jax.numpy as jnp
from jax import lax
from jax.experimental import pallas as pl
from jax.experimental.pallas import tpu as pltpu

SUBLANE = 8
LANE = 128


# ----------------------------------------------------------------------------
# Fused kernel factory: stacked GRU layers + Linear + sigmoid, single call.
# ----------------------------------------------------------------------------
def _make_net_kernel(num_layers, seq_len, b_pad, hidden, hidden_pad):
    T, Bp, H, Hp = seq_len, b_pad, hidden, hidden_pad
    G = 3 * Hp  # [r | z | n] blocks, each 128-lane aligned

    def kernel(x_ref, w_ih_ref, w_hh_ref, b_ref, lin_w_ref, lin_b_ref,
               out_ref, gi_ref, seq_ref):
        cur_in = x_ref                                   # (T*Bp, Hp) for layer 0
        for l in range(num_layers):
            # ---- prologue: hoisted input projection for ALL timesteps -------
            # ONE (T*Bp,Hp) x (Hp,3*Hp) matmul; (b_ir+b_hr), (b_iz+b_hz), b_in
            # folded into the bias row.  Lanes outside [0,H) of each block are 0.
            b_l = b_ref[l]                               # (2, G)
            gi_ref[...] = (jnp.dot(cur_in[...], w_ih_ref[l],
                                   preferred_element_type=jnp.float32)
                           + b_l[0:1, :])

            # ---- loop-invariant hoists (kept out of the unrolled loop) ------
            w_hh = w_hh_ref[l]                           # (H, G), small: ~12 vregs
            b_hn = jnp.broadcast_to(b_l[1:2, :Hp], (Bp, Hp))

            def step(t, h_prev, w_hh=w_hh, b_hn=b_hn):
                # h_prev lives in vregs; lanes [H,Hp) are always exactly zero.
                row = pl.multiple_of(t * Bp, Bp)
                gi_t = gi_ref[pl.ds(row, Bp), :]                        # (Bp, G)
                # ONE fused hidden projection: [r_hh | z_hh | n_hh]
                hh = jnp.dot(h_prev[:, :H], w_hh,
                             preferred_element_type=jnp.float32)        # (Bp, G)
                # ONE sigmoid over the r and z blocks (2 vregs wide).
                a = jax.nn.sigmoid(gi_t[:, :2 * Hp] + hh[:, :2 * Hp])
                r = a[:, :Hp]                                            # lanes 0:H
                z = a[:, Hp:]                                            # lanes 0:H
                n = jnp.tanh(gi_t[:, 2 * Hp:] + r * (hh[:, 2 * Hp:] + b_hn))
                h_new = n + z * (h_prev - n)          # == (1-z)*n + z*h_prev
                # lane-dense 128-wide store of this timestep's hidden state
                seq_ref[pl.ds(row, Bp), :] = h_new
                return h_new

            h0 = jnp.zeros((Bp, Hp), jnp.float32)
            lax.fori_loop(0, T, step, h0, unroll=True)
            cur_in = seq_ref                             # next layer consumes this

        # ---- epilogue: Linear + sigmoid on the whole (T*Bp, Hp) slab --------
        # Output last dim padded to 128 lanes -> single lane-dense store.
        y = jnp.dot(seq_ref[...], lin_w_ref[...],
                    preferred_element_type=jnp.float32) + lin_b_ref[...]
        out_ref[...] = jax.nn.sigmoid(y)

    return kernel


# ----------------------------------------------------------------------------
# One-time weight packing (gate split, bias folding, lane padding, stacking).
# ----------------------------------------------------------------------------
def pack_params(gru_params, lin_w, lin_b):
    H = gru_params[0][1].shape[0]                        # w_hh is (H, 3H)
    Hp = ((H + LANE - 1) // LANE) * LANE
    G = 3 * Hp
    L = len(gru_params)
    O = lin_w.shape[1]
    Op = ((O + LANE - 1) // LANE) * LANE

    w_ih_all = jnp.zeros((L, Hp, G), jnp.float32)        # input projections
    w_hh_all = jnp.zeros((L, H, G), jnp.float32)         # hidden projections
    b_all = jnp.zeros((L, 2, G), jnp.float32)            # [0]=gi bias, [1]=b_hn

    for l, (w_ih, w_hh, b_ih, b_hh) in enumerate(gru_params):
        d_in = w_ih.shape[0]
        assert d_in <= Hp, "layer input width must fit in one padded block"
        for g in range(3):                               # gate order (r, z, n)
            w_ih_all = w_ih_all.at[l, :d_in, g * Hp:g * Hp + H].set(
                w_ih[:, g * H:(g + 1) * H])
            w_hh_all = w_hh_all.at[l, :, g * Hp:g * Hp + H].set(
                w_hh[:, g * H:(g + 1) * H])
        # fold (b_ir+b_hr), (b_iz+b_hz), b_in into the hoisted input projection
        b_all = b_all.at[l, 0, 0 * Hp:0 * Hp + H].set(b_ih[0, :H] + b_hh[0, :H])
        b_all = b_all.at[l, 0, 1 * Hp:1 * Hp + H].set(
            b_ih[0, H:2 * H] + b_hh[0, H:2 * H])
        b_all = b_all.at[l, 0, 2 * Hp:2 * Hp + H].set(b_ih[0, 2 * H:3 * H])
        b_all = b_all.at[l, 1, :H].set(b_hh[0, 2 * H:3 * H])   # stays inside r*(...)

    lin_w_p = jnp.zeros((Hp, Op), jnp.float32).at[:H, :O].set(lin_w)
    lin_b_p = jnp.zeros((1, Op), jnp.float32).at[:, :O].set(lin_b)

    return dict(H=H, Hp=Hp, G=G, O=O, Op=Op, L=L,
                w_ih=w_ih_all, w_hh=w_hh_all, b=b_all,
                lin_w=lin_w_p, lin_b=lin_b_p)


# ----------------------------------------------------------------------------
# Wrapper: input layout + single pallas_call.
# ----------------------------------------------------------------------------
def net_forward(x_btd, packed):
    """x_btd: (B, T, input_size) -> (B, T, output_size)."""
    B, T, D = x_btd.shape
    H, Hp, G = packed["H"], packed["Hp"], packed["G"]
    O, Op, L = packed["O"], packed["Op"], packed["L"]
    assert D <= Hp
    Bp = ((B + SUBLANE - 1) // SUBLANE) * SUBLANE

    # Time-major, batch padded to sublane count, features padded to 128 lanes.
    x_tbd = jnp.transpose(x_btd, (1, 0, 2)).astype(jnp.float32)
    x_pad = jnp.zeros((T, Bp, Hp), jnp.float32).at[:, :B, :D].set(x_tbd)
    x_flat = x_pad.reshape(T * Bp, Hp)

    vmem = pl.BlockSpec(memory_space=pltpu.MemorySpace.VMEM)
    out = pl.pallas_call(
        _make_net_kernel(L, T, Bp, H, Hp),
        out_shape=jax.ShapeDtypeStruct((T * Bp, Op), jnp.float32),
        in_specs=[vmem] * 6,
        out_specs=vmem,
        scratch_shapes=[
            pltpu.VMEM((T * Bp, G), jnp.float32),    # gate pre-activations (all t)
            pltpu.VMEM((T * Bp, Hp), jnp.float32),   # layer hidden sequence
        ],
        compiler_params=pltpu.CompilerParams(
            # ~1 MiB resident here; explicit cap so scaling T/B stays honest on
            # v7x (64 MiB physical VMEM) as well as v5e/v6e.
            vmem_limit_bytes=32 * 1024 * 1024),
    )(x_flat, packed["w_ih"], packed["w_hh"], packed["b"],
      packed["lin_w"], packed["lin_b"])

    y = out.reshape(T, Bp, Op)[:, :B, :O]
    return jnp.transpose(y, (1, 0, 2))


# ----------------------------------------------------------------------------
# Pure-JAX reference (same math as torch nn.GRU + nn.Linear + sigmoid).
# ----------------------------------------------------------------------------
def net_reference(x_btd, gru_params, lin_w, lin_b):
    h_seq = x_btd
    for (w_ih, w_hh, b_ih, b_hh) in gru_params:
        B = h_seq.shape[0]
        H = w_hh.shape[0]

        def step(h, x_t, w_ih=w_ih, w_hh=w_hh, b_ih=b_ih, b_hh=b_hh, H=H):
            gi = x_t @ w_ih + b_ih
            gh = h @ w_hh + b_hh
            r = jax.nn.sigmoid(gi[:, :H] + gh[:, :H])
            z = jax.nn.sigmoid(gi[:, H:2 * H] + gh[:, H:2 * H])
            n = jnp.tanh(gi[:, 2 * H:] + r * gh[:, 2 * H:])
            h_new = (1.0 - z) * n + z * h
            return h_new, h_new

        xs = jnp.swapaxes(h_seq, 0, 1)                   # (T, B, D)
        _, ys = lax.scan(step, jnp.zeros((B, H), jnp.float32), xs)
        h_seq = jnp.swapaxes(ys, 0, 1)                   # (B, T, H)
    y = h_seq @ lin_w + lin_b
    return jax.nn.sigmoid(y)


def init_params(key, input_size, hidden_size, output_size, num_layers):
    """Deterministic init mimicking PyTorch uniform(-1/sqrt(H), 1/sqrt(H))."""
    bound = 1.0 / jnp.sqrt(jnp.float32(hidden_size))
    gru_params = []
    d_in = input_size
    for _ in range(num_layers):
        key, k1, k2, k3, k4 = jax.random.split(key, 5)
        # stored pre-transposed: (in, 3H) / (H, 3H); gate order (r, z, n)
        w_ih = jax.random.uniform(k1, (d_in, 3 * hidden_size), jnp.float32, -bound, bound)
        w_hh = jax.random.uniform(k2, (hidden_size, 3 * hidden_size), jnp.float32, -bound, bound)
        b_ih = jax.random.uniform(k3, (1, 3 * hidden_size), jnp.float32, -bound, bound)
        b_hh = jax.random.uniform(k4, (1, 3 * hidden_size), jnp.float32, -bound, bound)
        gru_params.append((w_ih, w_hh, b_ih, b_hh))
        d_in = hidden_size
    key, k1, k2 = jax.random.split(key, 3)
    lin_bound = 1.0 / jnp.sqrt(jnp.float32(hidden_size))
    lin_w = jax.random.uniform(k1, (hidden_size, output_size), jnp.float32, -lin_bound, lin_bound)
    lin_b = jax.random.uniform(k2, (1, output_size), jnp.float32, -lin_bound, lin_bound)
    return gru_params, lin_w, lin_b


if __name__ == "__main__":
    # Small shapes consistent with Net(input_size, hidden_size, output_size, num_layers)
    B, T = 4, 8
    input_size, hidden_size, output_size, num_layers = 8, 32, 8, 2

    key = jax.random.PRNGKey(0)
    key, kx = jax.random.split(key)
    x = jax.random.normal(kx, (B, T, input_size), jnp.float32)

    gru_params, lin_w, lin_b = init_params(key, input_size, hidden_size,
                                           output_size, num_layers)

    # Static weight packing happens ONCE, outside the per-forward path.
    packed = pack_params(gru_params, lin_w, lin_b)
    fwd = jax.jit(lambda xx: net_forward(xx, packed))

    out = jax.block_until_ready(fwd(x))

    ref = net_reference(x, gru_params, lin_w, lin_b)
    assert out.shape == (B, T, output_size)
    assert jnp.allclose(out, ref, atol=1e-5, rtol=1e-5), "mismatch vs reference"

    print("KERNEL_OK")
</pallas_src>

<mosaic_0001>
module attributes {stable_mosaic.version = 11 : i64} {
  func.func @kernel(%arg0: memref<64x128xf32, #tpu.memory_space<vmem>>, %arg1: memref<2x128x384xf32, #tpu.memory_space<vmem>>, %arg2: memref<2x32x384xf32, #tpu.memory_space<vmem>>, %arg3: memref<2x2x384xf32, #tpu.memory_space<vmem>>, %arg4: memref<128x128xf32, #tpu.memory_space<vmem>>, %arg5: memref<1x128xf32, #tpu.memory_space<vmem>>, %arg6: memref<64x128xf32, #tpu.memory_space<vmem>>, %arg7: memref<64x384xf32, #tpu.memory_space<vmem>>, %arg8: memref<64x128xf32, #tpu.memory_space<vmem>>) attributes {dimension_semantics = [], scalar_prefetch = 0 : i64, scratch_operands = 2 : i64, tpu.core_type = #tpu.core_type<tc>} {
    %c0 = arith.constant 0 : index
    %c0_0 = arith.constant 0 : index
    %c0_1 = arith.constant 0 : index
    %0 = vector.load %arg3[%c0, %c0_0, %c0_1] : memref<2x2x384xf32, #tpu.memory_space<vmem>>, vector<1x2x384xf32>
    %1 = vector.shape_cast %0 : vector<1x2x384xf32> to vector<2x384xf32>
    %c0_2 = arith.constant 0 : index
    %c0_3 = arith.constant 0 : index
    %2 = vector.load %arg0[%c0_2, %c0_3] : memref<64x128xf32, #tpu.memory_space<vmem>>, vector<64x128xf32>
    %c0_4 = arith.constant 0 : index
    %c0_5 = arith.constant 0 : index
    %c0_6 = arith.constant 0 : index
    %3 = vector.load %arg1[%c0_4, %c0_5, %c0_6] : memref<2x128x384xf32, #tpu.memory_space<vmem>>, vector<1x128x384xf32>
    %4 = vector.shape_cast %3 : vector<1x128x384xf32> to vector<128x384xf32>
    %cst = arith.constant dense<0.000000e+00> : vector<64x384xf32>
    %5 = tpu.matmul %2, %4, %cst {dimension_numbers = #tpu.dot_dimension_numbers<[1], [0], [0], [1], [0, 0, 1, 1], [], []>} : vector<64x128xf32>, vector<128x384xf32>, vector<64x384xf32> -> vector<64x384xf32>
    %6 = vector.extract_strided_slice %1 {offsets = [0, 0], sizes = [1, 384], strides = [1, 1]} : vector<2x384xf32> to vector<1x384xf32>
    %7 = vector.broadcast %6 : vector<1x384xf32> to vector<64x384xf32>
    %8 = arith.addf %5, %7 : vector<64x384xf32>
    %c0_7 = arith.constant 0 : index
    %c0_8 = arith.constant 0 : index
    %9 = vector.load %arg7[%c0_7, %c0_8] : memref<64x384xf32, #tpu.memory_space<vmem>>, vector<64x384xf32>
    tpu.vector_store %arg7[%c0_7, %c0_8], %8 {strides = array<i32>} : memref<64x384xf32, #tpu.memory_space<vmem>>, vector<64x384xf32>,
    %c0_9 = arith.constant 0 : index
    %c0_10 = arith.constant 0 : index
    %c0_11 = arith.constant 0 : index
    %10 = vector.load %arg2[%c0_9, %c0_10, %c0_11] : memref<2x32x384xf32, #tpu.memory_space<vmem>>, vector<1x32x384xf32>
    %11 = vector.shape_cast %10 : vector<1x32x384xf32> to vector<32x384xf32>
    %12 = vector.extract_strided_slice %1 {offsets = [1, 0], sizes = [1, 128], strides = [1, 1]} : vector<2x384xf32> to vector<1x128xf32>
    %13 = vector.shape_cast %12 : vector<1x128xf32> to vector<1x128xf32>
    %14 = vector.broadcast %13 : vector<1x128xf32> to vector<8x128xf32>
    %cst_12 = arith.constant 0.000000e+00 : f32
    %15 = vector.broadcast %cst_12 : f32 to vector<8x128xf32>
    %c0_i32 = arith.constant 0 : i32
    %c8_i32 = arith.constant 8 : i32
    %16 = arith.muli %c0_i32, %c8_i32 : i32
    %17 = tpu.assume_multiple %16, 8 : i32
    %18 = arith.index_cast %17 : i32 to index
    %c0_13 = arith.constant 0 : index
    %19 = vector.load %arg7[%18, %c0_13] : memref<64x384xf32, #tpu.memory_space<vmem>>, vector<8x384xf32>
    %20 = vector.extract_strided_slice %15 {offsets = [0, 0], sizes = [8, 32], strides = [1, 1]} : vector<8x128xf32> to vector<8x32xf32>
    %cst_14 = arith.constant dense<0.000000e+00> : vector<8x384xf32>
    %21 = tpu.matmul %20, %11, %cst_14 {dimension_numbers = #tpu.dot_dimension_numbers<[1], [0], [0], [1], [0, 0, 1, 1], [], []>} : vector<8x32xf32>, vector<32x384xf32>, vector<8x384xf32> -> vector<8x384xf32>
    %22 = vector.extract_strided_slice %19 {offsets = [0, 0], sizes = [8, 256], strides = [1, 1]} : vector<8x384xf32> to vector<8x256xf32>
    %23 = vector.extract_strided_slice %21 {offsets = [0, 0], sizes = [8, 256], strides = [1, 1]} : vector<8x384xf32> to vector<8x256xf32>
    %24 = arith.addf %22, %23 : vector<8x256xf32>
    %25 = arith.negf %24 : vector<8x256xf32>
    %26 = math.exp %25 : vector<8x256xf32>
    %cst_15 = arith.constant 1.000000e+00 : f32
    %27 = vector.broadcast %cst_15 : f32 to vector<8x256xf32>
    %28 = arith.addf %27, %26 : vector<8x256xf32>
    %29 = arith.divf %27, %28 : vector<8x256xf32>
    %30 = vector.extract_strided_slice %29 {offsets = [0, 0], sizes = [8, 128], strides = [1, 1]} : vector<8x256xf32> to vector<8x128xf32>
    %31 = vector.extract_strided_slice %29 {offsets = [0, 128], sizes = [8, 128], strides = [1, 1]} : vector<8x256xf32> to vector<8x128xf32>
    %32 = vector.extract_strided_slice %19 {offsets = [0, 256], sizes = [8, 128], strides = [1, 1]} : vector<8x384xf32> to vector<8x128xf32>
    %33 = vector.extract_strided_slice %21 {offsets = [0, 256], sizes = [8, 128], strides = [1, 1]} : vector<8x384xf32> to vector<8x128xf32>
    %34 = arith.addf %33, %14 : vector<8x128xf32>
    %35 = arith.mulf %30, %34 : vector<8x128xf32>
    %36 = arith.addf %32, %35 : vector<8x128xf32>
    %37 = math.tanh %36 : vector<8x128xf32>
    %38 = arith.subf %15, %37 : vector<8x128xf32>
    %39 = arith.mulf %31, %38 : vector<8x128xf32>
    %40 = arith.addf %37, %39 : vector<8x128xf32>
    %41 = arith.index_cast %17 : i32 to index
    %c0_16 = arith.constant 0 : index
    %42 = vector.load %arg8[%41, %c0_16] : memref<64x128xf32, #tpu.memory_space<vmem>>, vector<8x128xf32>
    tpu.vector_store %arg8[%41, %c0_16], %40 {strides = array<i32>} : memref<64x128xf32, #tpu.memory_space<vmem>>, vector<8x128xf32>,
    %c1_i32 = arith.constant 1 : i32
    %c8_i32_17 = arith.constant 8 : i32
    %43 = arith.muli %c1_i32, %c8_i32_17 : i32
    %44 = tpu.assume_multiple %43, 8 : i32
    %45 = arith.index_cast %44 : i32 to index
    %c0_18 = arith.constant 0 : index
    %46 = vector.load %arg7[%45, %c0_18] : memref<64x384xf32, #tpu.memory_space<vmem>>, vector<8x384xf32>
    %47 = vector.extract_strided_slice %40 {offsets = [0, 0], sizes = [8, 32], strides = [1, 1]} : vector<8x128xf32> to vector<8x32xf32>
    %cst_19 = arith.constant dense<0.000000e+00> : vector<8x384xf32>
    %48 = tpu.matmul %47, %11, %cst_19 {dimension_numbers = #tpu.dot_dimension_numbers<[1], [0], [0], [1], [0, 0, 1, 1], [], []>} : vector<8x32xf32>, vector<32x384xf32>, vector<8x384xf32> -> vector<8x384xf32>
    %49 = vector.extract_strided_slice %46 {offsets = [0, 0], sizes = [8, 256], strides = [1, 1]} : vector<8x384xf32> to vector<8x256xf32>
    %50 = vector.extract_strided_slice %48 {offsets = [0, 0], sizes = [8, 256], strides = [1, 1]} : vector<8x384xf32> to vector<8x256xf32>
    %51 = arith.addf %49, %50 : vector<8x256xf32>
    %52 = arith.negf %51 : vector<8x256xf32>
    %53 = math.exp %52 : vector<8x256xf32>
    %cst_20 = arith.constant 1.000000e+00 : f32
    %54 = vector.broadcast %cst_20 : f32 to vector<8x256xf32>
    %55 = arith.addf %54, %53 : vector<8x256xf32>
    %56 = arith.divf %54, %55 : vector<8x256xf32>
    %57 = vector.extract_strided_slice %56 {offsets = [0, 0], sizes = [8, 128], strides = [1, 1]} : vector<8x256xf32> to vector<8x128xf32>
    %58 = vector.extract_strided_slice %56 {offsets = [0, 128], sizes = [8, 128], strides = [1, 1]} : vector<8x256xf32> to vector<8x128xf32>
    %59 = vector.extract_strided_slice %46 {offsets = [0, 256], sizes = [8, 128], strides = [1, 1]} : vector<8x384xf32> to vector<8x128xf32>
    %60 = vector.extract_strided_slice %48 {offsets = [0, 256], sizes = [8, 128], strides = [1, 1]} : vector<8x384xf32> to vector<8x128xf32>
    %61 = arith.addf %60, %14 : vector<8x128xf32>
    %62 = arith.mulf %57, %61 : vector<8x128xf32>
    %63 = arith.addf %59, %62 : vector<8x128xf32>
    %64 = math.tanh %63 : vector<8x128xf32>
    %65 = arith.subf %40, %64 : vector<8x128xf32>
    %66 = arith.mulf %58, %65 : vector<8x128xf32>
    %67 = arith.addf %64, %66 : vector<8x128xf32>
    %68 = arith.index_cast %44 : i32 to index
    %c0_21 = arith.constant 0 : index
    %69 = vector.load %arg8[%68, %c0_21] : memref<64x128xf32, #tpu.memory_space<vmem>>, vector<8x128xf32>
    tpu.vector_store %arg8[%68, %c0_21], %67 {strides = array<i32>} : memref<64x128xf32, #tpu.memory_space<vmem>>, vector<8x128xf32>,
    %c2_i32 = arith.constant 2 : i32
    %c8_i32_22 = arith.constant 8 : i32
    %70 = arith.muli %c2_i32, %c8_i32_22 : i32
    %71 = tpu.assume_multiple %70, 8 : i32
    %72 = arith.index_cast %71 : i32 to index
    %c0_23 = arith.constant 0 : index
    %73 = vector.load %arg7[%72, %c0_23] : memref<64x384xf32, #tpu.memory_space<vmem>>, vector<8x384xf32>
    %74 = vector.extract_strided_slice %67 {offsets = [0, 0], sizes = [8, 32], strides = [1, 1]} : vector<8x128xf32> to vector<8x32xf32>
    %cst_24 = arith.constant dense<0.000000e+00> : vector<8x384xf32>
    %75 = tpu.matmul %74, %11, %cst_24 {dimension_numbers = #tpu.dot_dimension_numbers<[1], [0], [0], [1], [0, 0, 1, 1], [], []>} : vector<8x32xf32>, vector<32x384xf32>, vector<8x384xf32> -> vector<8x384xf32>
    %76 = vector.extract_strided_slice %73 {offsets = [0, 0], sizes = [8, 256], strides = [1, 1]} : vector<8x384xf32> to vector<8x256xf32>
    %77 = vector.extract_strided_slice %75 {offsets = [0, 0], sizes = [8, 256], strides = [1, 1]} : vector<8x384xf32> to vector<8x256xf32>
    %78 = arith.addf %76, %77 : vector<8x256xf32>
    %79 = arith.negf %78 : vector<8x256xf32>
    %80 = math.exp %79 : vector<8x256xf32>
    %cst_25 = arith.constant 1.000000e+00 : f32
    %81 = vector.broadcast %cst_25 : f32 to vector<8x256xf32>
    %82 = arith.addf %81, %80 : vector<8x256xf32>
    %83 = arith.divf %81, %82 : vector<8x256xf32>
    %84 = vector.extract_strided_slice %83 {offsets = [0, 0], sizes = [8, 128], strides = [1, 1]} : vector<8x256xf32> to vector<8x128xf32>
    %85 = vector.extract_strided_slice %83 {offsets = [0, 128], sizes = [8, 128], strides = [1, 1]} : vector<8x256xf32> to vector<8x128xf32>
    %86 = vector.extract_strided_slice %73 {offsets = [0, 256], sizes = [8, 128], strides = [1, 1]} : vector<8x384xf32> to vector<8x128xf32>
    %87 = vector.extract_strided_slice %75 {offsets = [0, 256], sizes = [8, 128], strides = [1, 1]} : vector<8x384xf32> to vector<8x128xf32>
    %88 = arith.addf %87, %14 : vector<8x128xf32>
    %89 = arith.mulf %84, %88 : vector<8x128xf32>
    %90 = arith.addf %86, %89 : vector<8x128xf32>
    %91 = math.tanh %90 : vector<8x128xf32>
    %92 = arith.subf %67, %91 : vector<8x128xf32>
    %93 = arith.mulf %85, %92 : vector<8x128xf32>
    %94 = arith.addf %91, %93 : vector<8x128xf32>
    %95 = arith.index_cast %71 : i32 to index
    %c0_26 = arith.constant 0 : index
    %96 = vector.load %arg8[%95, %c0_26] : memref<64x128xf32, #tpu.memory_space<vmem>>, vector<8x128xf32>
    tpu.vector_store %arg8[%95, %c0_26], %94 {strides = array<i32>} : memref<64x128xf32, #tpu.memory_space<vmem>>, vector<8x128xf32>,
    %c3_i32 = arith.constant 3 : i32
    %c8_i32_27 = arith.constant 8 : i32
    %97 = arith.muli %c3_i32, %c8_i32_27 : i32
    %98 = tpu.assume_multiple %97, 8 : i32
    %99 = arith.index_cast %98 : i32 to index
    %c0_28 = arith.constant 0 : index
    %100 = vector.load %arg7[%99, %c0_28] : memref<64x384xf32, #tpu.memory_space<vmem>>, vector<8x384xf32>
    %101 = vector.extract_strided_slice %94 {offsets = [0, 0], sizes = [8, 32], strides = [1, 1]} : vector<8x128xf32> to vector<8x32xf32>
    %cst_29 = arith.constant dense<0.000000e+00> : vector<8x384xf32>
    %102 = tpu.matmul %101, %11, %cst_29 {dimension_numbers = #tpu.dot_dimension_numbers<[1], [0], [0], [1], [0, 0, 1, 1], [], []>} : vector<8x32xf32>, vector<32x384xf32>, vector<8x384xf32> -> vector<8x384xf32>
    %103 = vector.extract_strided_slice %100 {offsets = [0, 0], sizes = [8, 256], strides = [1, 1]} : vector<8x384xf32> to vector<8x256xf32>
    %104 = vector.extract_strided_slice %102 {offsets = [0, 0], sizes = [8, 256], strides = [1, 1]} : vector<8x384xf32> to vector<8x256xf32>
    %105 = arith.addf %103, %104 : vector<8x256xf32>
    %106 = arith.negf %105 : vector<8x256xf32>
    %107 = math.exp %106 : vector<8x256xf32>
    %cst_30 = arith.constant 1.000000e+00 : f32
    %108 = vector.broadcast %cst_30 : f32 to vector<8x256xf32>
    %109 = arith.addf %108, %107 : vector<8x256xf32>
    %110 = arith.divf %108, %109 : vector<8x256xf32>
    %111 = vector.extract_strided_slice %110 {offsets = [0, 0], sizes = [8, 128], strides = [1, 1]} : vector<8x256xf32> to vector<8x128xf32>
    %112 = vector.extract_strided_slice %110 {offsets = [0, 128], sizes = [8, 128], strides = [1, 1]} : vector<8x256xf32> to vector<8x128xf32>
    %113 = vector.extract_strided_slice %100 {offsets = [0, 256], sizes = [8, 128], strides = [1, 1]} : vector<8x384xf32> to vector<8x128xf32>
    %114 = vector.extract_strided_slice %102 {offsets = [0, 256], sizes = [8, 128], strides = [1, 1]} : vector<8x384xf32> to vector<8x128xf32>
    %115 = arith.addf %114, %14 : vector<8x128xf32>
    %116 = arith.mulf %111, %115 : vector<8x128xf32>
    %117 = arith.addf %113, %116 : vector<8x128xf32>
    %118 = math.tanh %117 : vector<8x128xf32>
    %119 = arith.subf %94, %118 : vector<8x128xf32>
    %120 = arith.mulf %112, %119 : vector<8x128xf32>
    %121 = arith.addf %118, %120 : vector<8x128xf32>
    %122 = arith.index_cast %98 : i32 to index
    %c0_31 = arith.constant 0 : index
    %123 = vector.load %arg8[%122, %c0_31] : memref<64x128xf32, #tpu.memory_space<vmem>>, vector<8x128xf32>
    tpu.vector_store %arg8[%122, %c0_31], %121 {strides = array<i32>} : memref<64x128xf32, #tpu.memory_space<vmem>>, vector<8x128xf32>,
    %c4_i32 = arith.constant 4 : i32
    %c8_i32_32 = arith.constant 8 : i32
    %124 = arith.muli %c4_i32, %c8_i32_32 : i32
    %125 = tpu.assume_multiple %124, 8 : i32
    %126 = arith.index_cast %125 : i32 to index
    %c0_33 = arith.constant 0 : index
    %127 = vector.load %arg7[%126, %c0_33] : memref<64x384xf32, #tpu.memory_space<vmem>>, vector<8x384xf32>
    %128 = vector.extract_strided_slice %121 {offsets = [0, 0], sizes = [8, 32], strides = [1, 1]} : vector<8x128xf32> to vector<8x32xf32>
    %cst_34 = arith.constant dense<0.000000e+00> : vector<8x384xf32>
    %129 = tpu.matmul %128, %11, %cst_34 {dimension_numbers = #tpu.dot_dimension_numbers<[1], [0], [0], [1], [0, 0, 1, 1], [], []>} : vector<8x32xf32>, vector<32x384xf32>, vector<8x384xf32> -> vector<8x384xf32>
    %130 = vector.extract_strided_slice %127 {offsets = [0, 0], sizes = [8, 256], strides = [1, 1]} : vector<8x384xf32> to vector<8x256xf32>
    %131 = vector.extract_strided_slice %129 {offsets = [0, 0], sizes = [8, 256], strides = [1, 1]} : vector<8x384xf32> to vector<8x256xf32>
    %132 = arith.addf %130, %131 : vector<8x256xf32>
    %133 = arith.negf %132 : vector<8x256xf32>
    %134 = math.exp %133 : vector<8x256xf32>
    %cst_35 = arith.constant 1.000000e+00 : f32
    %135 = vector.broadcast %cst_35 : f32 to vector<8x256xf32>
    %136 = arith.addf %135, %134 : vector<8x256xf32>
    %137 = arith.divf %135, %136 : vector<8x256xf32>
    %138 = vector.extract_strided_slice %137 {offsets = [0, 0], sizes = [8, 128], strides = [1, 1]} : vector<8x256xf32> to vector<8x128xf32>
    %139 = vector.extract_strided_slice %137 {offsets = [0, 128], sizes = [8, 128], strides = [1, 1]} : vector<8x256xf32> to vector<8x128xf32>
    %140 = vector.extract_strided_slice %127 {offsets = [0, 256], sizes = [8, 128], strides = [1, 1]} : vector<8x384xf32> to vector<8x128xf32>
    %141 = vector.extract_strided_slice %129 {offsets = [0, 256], sizes = [8, 128], strides = [1, 1]} : vector<8x384xf32> to vector<8x128xf32>
    %142 = arith.addf %141, %14 : vector<8x128xf32>
    %143 = arith.mulf %138, %142 : vector<8x128xf32>
    %144 = arith.addf %140, %143 : vector<8x128xf32>
    %145 = math.tanh %144 : vector<8x128xf32>
    %146 = arith.subf %121, %145 : vector<8x128xf32>
    %147 = arith.mulf %139, %146 : vector<8x128xf32>
    %148 = arith.addf %145, %147 : vector<8x128xf32>
    %149 = arith.index_cast %125 : i32 to index
    %c0_36 = arith.constant 0 : index
    %150 = vector.load %arg8[%149, %c0_36] : memref<64x128xf32, #tpu.memory_space<vmem>>, vector<8x128xf32>
    tpu.vector_store %arg8[%149, %c0_36], %148 {strides = array<i32>} : memref<64x128xf32, #tpu.memory_space<vmem>>, vector<8x128xf32>,
    %c5_i32 = arith.constant 5 : i32
    %c8_i32_37 = arith.constant 8 : i32
    %151 = arith.muli %c5_i32, %c8_i32_37 : i32
    %152 = tpu.assume_multiple %151, 8 : i32
    %153 = arith.index_cast %152 : i32 to index
    %c0_38 = arith.constant 0 : index
    %154 = vector.load %arg7[%153, %c0_38] : memref<64x384xf32, #tpu.memory_space<vmem>>, vector<8x384xf32>
    %155 = vector.extract_strided_slice %148 {offsets = [0, 0], sizes = [8, 32], strides = [1, 1]} : vector<8x128xf32> to vector<8x32xf32>
    %cst_39 = arith.constant dense<0.000000e+00> : vector<8x384xf32>
    %156 = tpu.matmul %155, %11, %cst_39 {dimension_numbers = #tpu.dot_dimension_numbers<[1], [0], [0], [1], [0, 0, 1, 1], [], []>} : vector<8x32xf32>, vector<32x384xf32>, vector<8x384xf32> -> vector<8x384xf32>
    %157 = vector.extract_strided_slice %154 {offsets = [0, 0], sizes = [8, 256], strides = [1, 1]} : vector<8x384xf32> to vector<8x256xf32>
    %158 = vector.extract_strided_slice %156 {offsets = [0, 0], sizes = [8, 256], strides = [1, 1]} : vector<8x384xf32> to vector<8x256xf32>
    %159 = arith.addf %157, %158 : vector<8x256xf32>
    %160 = arith.negf %159 : vector<8x256xf32>
    %161 = math.exp %160 : vector<8x256xf32>
    %cst_40 = arith.constant 1.000000e+00 : f32
    %162 = vector.broadcast %cst_40 : f32 to vector<8x256xf32>
    %163 = arith.addf %162, %161 : vector<8x256xf32>
    %164 = arith.divf %162, %163 : vector<8x256xf32>
    %165 = vector.extract_strided_slice %164 {offsets = [0, 0], sizes = [8, 128], strides = [1, 1]} : vector<8x256xf32> to vector<8x128xf32>
    %166 = vector.extract_strided_slice %164 {offsets = [0, 128], sizes = [8, 128], strides = [1, 1]} : vector<8x256xf32> to vector<8x128xf32>
    %167 = vector.extract_strided_slice %154 {offsets = [0, 256], sizes = [8, 128], strides = [1, 1]} : vector<8x384xf32> to vector<8x128xf32>
    %168 = vector.extract_strided_slice %156 {offsets = [0, 256], sizes = [8, 128], strides = [1, 1]} : vector<8x384xf32> to vector<8x128xf32>
    %169 = arith.addf %168, %14 : vector<8x128xf32>
    %170 = arith.mulf %165, %169 : vector<8x128xf32>
    %171 = arith.addf %167, %170 : vector<8x128xf32>
    %172 = math.tanh %171 : vector<8x128xf32>
    %173 = arith.subf %148, %172 : vector<8x128xf32>
    %174 = arith.mulf %166, %173 : vector<8x128xf32>
    %175 = arith.addf %172, %174 : vector<8x128xf32>
    %176 = arith.index_cast %152 : i32 to index
    %c0_41 = arith.constant 0 : index
    %177 = vector.load %arg8[%176, %c0_41] : memref<64x128xf32, #tpu.memory_space<vmem>>, vector<8x128xf32>
    tpu.vector_store %arg8[%176, %c0_41], %175 {strides = array<i32>} : memref<64x128xf32, #tpu.memory_space<vmem>>, vector<8x128xf32>,
    %c6_i32 = arith.constant 6 : i32
    %c8_i32_42 = arith.constant 8 : i32
    %178 = arith.muli %c6_i32, %c8_i32_42 : i32
    %179 = tpu.assume_multiple %178, 8 : i32
    %180 = arith.index_cast %179 : i32 to index
    %c0_43 = arith.constant 0 : index
    %181 = vector.load %arg7[%180, %c0_43] : memref<64x384xf32, #tpu.memory_space<vmem>>, vector<8x384xf32>
    %182 = vector.extract_strided_slice %175 {offsets = [0, 0], sizes = [8, 32], strides = [1, 1]} : vector<8x128xf32> to vector<8x32xf32>
    %cst_44 = arith.constant dense<0.000000e+00> : vector<8x384xf32>
    %183 = tpu.matmul %182, %11, %cst_44 {dimension_numbers = #tpu.dot_dimension_numbers<[1], [0], [0], [1], [0, 0, 1, 1], [], []>} : vector<8x32xf32>, vector<32x384xf32>, vector<8x384xf32> -> vector<8x384xf32>
    %184 = vector.extract_strided_slice %181 {offsets = [0, 0], sizes = [8, 256], strides = [1, 1]} : vector<8x384xf32> to vector<8x256xf32>
    %185 = vector.extract_strided_slice %183 {offsets = [0, 0], sizes = [8, 256], strides = [1, 1]} : vector<8x384xf32> to vector<8x256xf32>
    %186 = arith.addf %184, %185 : vector<8x256xf32>
    %187 = arith.negf %186 : vector<8x256xf32>
    %188 = math.exp %187 : vector<8x256xf32>
    %cst_45 = arith.constant 1.000000e+00 : f32
    %189 = vector.broadcast %cst_45 : f32 to vector<8x256xf32>
    %190 = arith.addf %189, %188 : vector<8x256xf32>
    %191 = arith.divf %189, %190 : vector<8x256xf32>
    %192 = vector.extract_strided_slice %191 {offsets = [0, 0], sizes = [8, 128], strides = [1, 1]} : vector<8x256xf32> to vector<8x128xf32>
    %193 = vector.extract_strided_slice %191 {offsets = [0, 128], sizes = [8, 128], strides = [1, 1]} : vector<8x256xf32> to vector<8x128xf32>
    %194 = vector.extract_strided_slice %181 {offsets = [0, 256], sizes = [8, 128], strides = [1, 1]} : vector<8x384xf32> to vector<8x128xf32>
    %195 = vector.extract_strided_slice %183 {offsets = [0, 256], sizes = [8, 128], strides = [1, 1]} : vector<8x384xf32> to vector<8x128xf32>
    %196 = arith.addf %195, %14 : vector<8x128xf32>
    %197 = arith.mulf %192, %196 : vector<8x128xf32>
    %198 = arith.addf %194, %197 : vector<8x128xf32>
    %199 = math.tanh %198 : vector<8x128xf32>
    %200 = arith.subf %175, %199 : vector<8x128xf32>
    %201 = arith.mulf %193, %200 : vector<8x128xf32>
    %202 = arith.addf %199, %201 : vector<8x128xf32>
    %203 = arith.index_cast %179 : i32 to index
    %c0_46 = arith.constant 0 : index
    %204 = vector.load %arg8[%203, %c0_46] : memref<64x128xf32, #tpu.memory_space<vmem>>, vector<8x128xf32>
    tpu.vector_store %arg8[%203, %c0_46], %202 {strides = array<i32>} : memref<64x128xf32, #tpu.memory_space<vmem>>, vector<8x128xf32>,
    %c7_i32 = arith.constant 7 : i32
    %c8_i32_47 = arith.constant 8 : i32
    %205 = arith.muli %c7_i32, %c8_i32_47 : i32
    %206 = tpu.assume_multiple %205, 8 : i32
    %207 = arith.index_cast %206 : i32 to index
    %c0_48 = arith.constant 0 : index
    %208 = vector.load %arg7[%207, %c0_48] : memref<64x384xf32, #tpu.memory_space<vmem>>, vector<8x384xf32>
    %209 = vector.extract_strided_slice %202 {offsets = [0, 0], sizes = [8, 32], strides = [1, 1]} : vector<8x128xf32> to vector<8x32xf32>
    %cst_49 = arith.constant dense<0.000000e+00> : vector<8x384xf32>
    %210 = tpu.matmul %209, %11, %cst_49 {dimension_numbers = #tpu.dot_dimension_numbers<[1], [0], [0], [1], [0, 0, 1, 1], [], []>} : vector<8x32xf32>, vector<32x384xf32>, vector<8x384xf32> -> vector<8x384xf32>
    %211 = vector.extract_strided_slice %208 {offsets = [0, 0], sizes = [8, 256], strides = [1, 1]} : vector<8x384xf32> to vector<8x256xf32>
    %212 = vector.extract_strided_slice %210 {offsets = [0, 0], sizes = [8, 256], strides = [1, 1]} : vector<8x384xf32> to vector<8x256xf32>
    %213 = arith.addf %211, %212 : vector<8x256xf32>
    %214 = arith.negf %213 : vector<8x256xf32>
    %215 = math.exp %214 : vector<8x256xf32>
    %cst_50 = arith.constant 1.000000e+00 : f32
    %216 = vector.broadcast %cst_50 : f32 to vector<8x256xf32>
    %217 = arith.addf %216, %215 : vector<8x256xf32>
    %218 = arith.divf %216, %217 : vector<8x256xf32>
    %219 = vector.extract_strided_slice %218 {offsets = [0, 0], sizes = [8, 128], strides = [1, 1]} : vector<8x256xf32> to vector<8x128xf32>
    %220 = vector.extract_strided_slice %218 {offsets = [0, 128], sizes = [8, 128], strides = [1, 1]} : vector<8x256xf32> to vector<8x128xf32>
    %221 = vector.extract_strided_slice %208 {offsets = [0, 256], sizes = [8, 128], strides = [1, 1]} : vector<8x384xf32> to vector<8x128xf32>
    %222 = vector.extract_strided_slice %210 {offsets = [0, 256], sizes = [8, 128], strides = [1, 1]} : vector<8x384xf32> to vector<8x128xf32>
    %223 = arith.addf %222, %14 : vector<8x128xf32>
    %224 = arith.mulf %219, %223 : vector<8x128xf32>
    %225 = arith.addf %221, %224 : vector<8x128xf32>
    %226 = math.tanh %225 : vector<8x128xf32>
    %227 = arith.subf %202, %226 : vector<8x128xf32>
    %228 = arith.mulf %220, %227 : vector<8x128xf32>
    %229 = arith.addf %226, %228 : vector<8x128xf32>
    %230 = arith.index_cast %206 : i32 to index
    %c0_51 = arith.constant 0 : index
    %231 = vector.load %arg8[%230, %c0_51] : memref<64x128xf32, #tpu.memory_space<vmem>>, vector<8x128xf32>
    tpu.vector_store %arg8[%230, %c0_51], %229 {strides = array<i32>} : memref<64x128xf32, #tpu.memory_space<vmem>>, vector<8x128xf32>,
    %c8_i32_52 = arith.constant 8 : i32
    %c1 = arith.constant 1 : index
    %c0_53 = arith.constant 0 : index
    %c0_54 = arith.constant 0 : index
    %232 = vector.load %arg3[%c1, %c0_53, %c0_54] : memref<2x2x384xf32, #tpu.memory_space<vmem>>, vector<1x2x384xf32>
    %233 = vector.shape_cast %232 : vector<1x2x384xf32> to vector<2x384xf32>
    %c0_55 = arith.constant 0 : index
    %c0_56 = arith.constant 0 : index
    %234 = vector.load %arg8[%c0_55, %c0_56] : memref<64x128xf32, #tpu.memory_space<vmem>>, vector<64x128xf32>
    %c1_57 = arith.constant 1 : index
    %c0_58 = arith.constant 0 : index
    %c0_59 = arith.constant 0 : index
    %235 = vector.load %arg1[%c1_57, %c0_58, %c0_59] : memref<2x128x384xf32, #tpu.memory_space<vmem>>, vector<1x128x384xf32>
    %236 = vector.shape_cast %235 : vector<1x128x384xf32> to vector<128x384xf32>
    %cst_60 = arith.constant dense<0.000000e+00> : vector<64x384xf32>
    %237 = tpu.matmul %234, %236, %cst_60 {dimension_numbers = #tpu.dot_dimension_numbers<[1], [0], [0], [1], [0, 0, 1, 1], [], []>} : vector<64x128xf32>, vector<128x384xf32>, vector<64x384xf32> -> vector<64x384xf32>
    %238 = vector.extract_strided_slice %233 {offsets = [0, 0], sizes = [1, 384], strides = [1, 1]} : vector<2x384xf32> to vector<1x384xf32>
    %239 = vector.broadcast %238 : vector<1x384xf32> to vector<64x384xf32>
    %240 = arith.addf %237, %239 : vector<64x384xf32>
    %c0_61 = arith.constant 0 : index
    %c0_62 = arith.constant 0 : index
    %241 = vector.load %arg7[%c0_61, %c0_62] : memref<64x384xf32, #tpu.memory_space<vmem>>, vector<64x384xf32>
    tpu.vector_store %arg7[%c0_61, %c0_62], %240 {strides = array<i32>} : memref<64x384xf32, #tpu.memory_space<vmem>>, vector<64x384xf32>,
    %c1_63 = arith.constant 1 : index
    %c0_64 = arith.constant 0 : index
    %c0_65 = arith.constant 0 : index
    %242 = vector.load %arg2[%c1_63, %c0_64, %c0_65] : memref<2x32x384xf32, #tpu.memory_space<vmem>>, vector<1x32x384xf32>
    %243 = vector.shape_cast %242 : vector<1x32x384xf32> to vector<32x384xf32>
    %244 = vector.extract_strided_slice %233 {offsets = [1, 0], sizes = [1, 128], strides = [1, 1]} : vector<2x384xf32> to vector<1x128xf32>
    %245 = vector.shape_cast %244 : vector<1x128xf32> to vector<1x128xf32>
    %246 = vector.broadcast %245 : vector<1x128xf32> to vector<8x128xf32>
    %cst_66 = arith.constant 0.000000e+00 : f32
    %247 = vector.broadcast %cst_66 : f32 to vector<8x128xf32>
    %c0_i32_67 = arith.constant 0 : i32
    %c8_i32_68 = arith.constant 8 : i32
    %248 = arith.muli %c0_i32_67, %c8_i32_68 : i32
    %249 = tpu.assume_multiple %248, 8 : i32
    %250 = arith.index_cast %249 : i32 to index
    %c0_69 = arith.constant 0 : index
    %251 = vector.load %arg7[%250, %c0_69] : memref<64x384xf32, #tpu.memory_space<vmem>>, vector<8x384xf32>
    %252 = vector.extract_strided_slice %247 {offsets = [0, 0], sizes = [8, 32], strides = [1, 1]} : vector<8x128xf32> to vector<8x32xf32>
    %cst_70 = arith.constant dense<0.000000e+00> : vector<8x384xf32>
    %253 = tpu.matmul %252, %243, %cst_70 {dimension_numbers = #tpu.dot_dimension_numbers<[1], [0], [0], [1], [0, 0, 1, 1], [], []>} : vector<8x32xf32>, vector<32x384xf32>, vector<8x384xf32> -> vector<8x384xf32>
    %254 = vector.extract_strided_slice %251 {offsets = [0, 0], sizes = [8, 256], strides = [1, 1]} : vector<8x384xf32> to vector<8x256xf32>
    %255 = vector.extract_strided_slice %253 {offsets = [0, 0], sizes = [8, 256], strides = [1, 1]} : vector<8x384xf32> to vector<8x256xf32>
    %256 = arith.addf %254, %255 : vector<8x256xf32>
    %257 = arith.negf %256 : vector<8x256xf32>
    %258 = math.exp %257 : vector<8x256xf32>
    %cst_71 = arith.constant 1.000000e+00 : f32
    %259 = vector.broadcast %cst_71 : f32 to vector<8x256xf32>
    %260 = arith.addf %259, %258 : vector<8x256xf32>
    %261 = arith.divf %259, %260 : vector<8x256xf32>
    %262 = vector.extract_strided_slice %261 {offsets = [0, 0], sizes = [8, 128], strides = [1, 1]} : vector<8x256xf32> to vector<8x128xf32>
    %263 = vector.extract_strided_slice %261 {offsets = [0, 128], sizes = [8, 128], strides = [1, 1]} : vector<8x256xf32> to vector<8x128xf32>
    %264 = vector.extract_strided_slice %251 {offsets = [0, 256], sizes = [8, 128], strides = [1, 1]} : vector<8x384xf32> to vector<8x128xf32>
    %265 = vector.extract_strided_slice %253 {offsets = [0, 256], sizes = [8, 128], strides = [1, 1]} : vector<8x384xf32> to vector<8x128xf32>
    %266 = arith.addf %265, %246 : vector<8x128xf32>
    %267 = arith.mulf %262, %266 : vector<8x128xf32>
    %268 = arith.addf %264, %267 : vector<8x128xf32>
    %269 = math.tanh %268 : vector<8x128xf32>
    %270 = arith.subf %247, %269 : vector<8x128xf32>
    %271 = arith.mulf %263, %270 : vector<8x128xf32>
    %272 = arith.addf %269, %271 : vector<8x128xf32>
    %273 = arith.index_cast %249 : i32 to index
    %c0_72 = arith.constant 0 : index
    %274 = vector.load %arg8[%273, %c0_72] : memref<64x128xf32, #tpu.memory_space<vmem>>, vector<8x128xf32>
    tpu.vector_store %arg8[%273, %c0_72], %272 {strides = array<i32>} : memref<64x128xf32, #tpu.memory_space<vmem>>, vector<8x128xf32>,
    %c1_i32_73 = arith.constant 1 : i32
    %c8_i32_74 = arith.constant 8 : i32
    %275 = arith.muli %c1_i32_73, %c8_i32_74 : i32
    %276 = tpu.assume_multiple %275, 8 : i32
    %277 = arith.index_cast %276 : i32 to index
    %c0_75 = arith.constant 0 : index
    %278 = vector.load %arg7[%277, %c0_75] : memref<64x384xf32, #tpu.memory_space<vmem>>, vector<8x384xf32>
    %279 = vector.extract_strided_slice %272 {offsets = [0, 0], sizes = [8, 32], strides = [1, 1]} : vector<8x128xf32> to vector<8x32xf32>
    %cst_76 = arith.constant dense<0.000000e+00> : vector<8x384xf32>
    %280 = tpu.matmul %279, %243, %cst_76 {dimension_numbers = #tpu.dot_dimension_numbers<[1], [0], [0], [1], [0, 0, 1, 1], [], []>} : vector<8x32xf32>, vector<32x384xf32>, vector<8x384xf32> -> vector<8x384xf32>
    %281 = vector.extract_strided_slice %278 {offsets = [0, 0], sizes = [8, 256], strides = [1, 1]} : vector<8x384xf32> to vector<8x256xf32>
    %282 = vector.extract_strided_slice %280 {offsets = [0, 0], sizes = [8, 256], strides = [1, 1]} : vector<8x384xf32> to vector<8x256xf32>
    %283 = arith.addf %281, %282 : vector<8x256xf32>
    %284 = arith.negf %283 : vector<8x256xf32>
    %285 = math.exp %284 : vector<8x256xf32>
    %cst_77 = arith.constant 1.000000e+00 : f32
    %286 = vector.broadcast %cst_77 : f32 to vector<8x256xf32>
    %287 = arith.addf %286, %285 : vector<8x256xf32>
    %288 = arith.divf %286, %287 : vector<8x256xf32>
    %289 = vector.extract_strided_slice %288 {offsets = [0, 0], sizes = [8, 128], strides = [1, 1]} : vector<8x256xf32> to vector<8x128xf32>
    %290 = vector.extract_strided_slice %288 {offsets = [0, 128], sizes = [8, 128], strides = [1, 1]} : vector<8x256xf32> to vector<8x128xf32>
    %291 = vector.extract_strided_slice %278 {offsets = [0, 256], sizes = [8, 128], strides = [1, 1]} : vector<8x384xf32> to vector<8x128xf32>
    %292 = vector.extract_strided_slice %280 {offsets = [0, 256], sizes = [8, 128], strides = [1, 1]} : vector<8x384xf32> to vector<8x128xf32>
    %293 = arith.addf %292, %246 : vector<8x128xf32>
    %294 = arith.mulf %289, %293 : vector<8x128xf32>
    %295 = arith.addf %291, %294 : vector<8x128xf32>
    %296 = math.tanh %295 : vector<8x128xf32>
    %297 = arith.subf %272, %296 : vector<8x128xf32>
    %298 = arith.mulf %290, %297 : vector<8x128xf32>
    %299 = arith.addf %296, %298 : vector<8x128xf32>
    %300 = arith.index_cast %276 : i32 to index
    %c0_78 = arith.constant 0 : index
    %301 = vector.load %arg8[%300, %c0_78] : memref<64x128xf32, #tpu.memory_space<vmem>>, vector<8x128xf32>
    tpu.vector_store %arg8[%300, %c0_78], %299 {strides = array<i32>} : memref<64x128xf32, #tpu.memory_space<vmem>>, vector<8x128xf32>,
    %c2_i32_79 = arith.constant 2 : i32
    %c8_i32_80 = arith.constant 8 : i32
    %302 = arith.muli %c2_i32_79, %c8_i32_80 : i32
    %303 = tpu.assume_multiple %302, 8 : i32
    %304 = arith.index_cast %303 : i32 to index
    %c0_81 = arith.constant 0 : index
    %305 = vector.load %arg7[%304, %c0_81] : memref<64x384xf32, #tpu.memory_space<vmem>>, vector<8x384xf32>
    %306 = vector.extract_strided_slice %299 {offsets = [0, 0], sizes = [8, 32], strides = [1, 1]} : vector<8x128xf32> to vector<8x32xf32>
    %cst_82 = arith.constant dense<0.000000e+00> : vector<8x384xf32>
    %307 = tpu.matmul %306, %243, %cst_82 {dimension_numbers = #tpu.dot_dimension_numbers<[1], [0], [0], [1], [0, 0, 1, 1], [], []>} : vector<8x32xf32>, vector<32x384xf32>, vector<8x384xf32> -> vector<8x384xf32>
    %308 = vector.extract_strided_slice %305 {offsets = [0, 0], sizes = [8, 256], strides = [1, 1]} : vector<8x384xf32> to vector<8x256xf32>
    %309 = vector.extract_strided_slice %307 {offsets = [0, 0], sizes = [8, 256], strides = [1, 1]} : vector<8x384xf32> to vector<8x256xf32>
    %310 = arith.addf %308, %309 : vector<8x256xf32>
    %311 = arith.negf %310 : vector<8x256xf32>
    %312 = math.exp %311 : vector<8x256xf32>
    %cst_83 = arith.constant 1.000000e+00 : f32
    %313 = vector.broadcast %cst_83 : f32 to vector<8x256xf32>
    %314 = arith.addf %313, %312 : vector<8x256xf32>
    %315 = arith.divf %313, %314 : vector<8x256xf32>
    %316 = vector.extract_strided_slice %315 {offsets = [0, 0], sizes = [8, 128], strides = [1, 1]} : vector<8x256xf32> to vector<8x128xf32>
    %317 = vector.extract_strided_slice %315 {offsets = [0, 128], sizes = [8, 128], strides = [1, 1]} : vector<8x256xf32> to vector<8x128xf32>
    %318 = vector.extract_strided_slice %305 {offsets = [0, 256], sizes = [8, 128], strides = [1, 1]} : vector<8x384xf32> to vector<8x128xf32>
    %319 = vector.extract_strided_slice %307 {offsets = [0, 256], sizes = [8, 128], strides = [1, 1]} : vector<8x384xf32> to vector<8x128xf32>
    %320 = arith.addf %319, %246 : vector<8x128xf32>
    %321 = arith.mulf %316, %320 : vector<8x128xf32>
    %322 = arith.addf %318, %321 : vector<8x128xf32>
    %323 = math.tanh %322 : vector<8x128xf32>
    %324 = arith.subf %299, %323 : vector<8x128xf32>
    %325 = arith.mulf %317, %324 : vector<8x128xf32>
    %326 = arith.addf %323, %325 : vector<8x128xf32>
    %327 = arith.index_cast %303 : i32 to index
    %c0_84 = arith.constant 0 : index
    %328 = vector.load %arg8[%327, %c0_84] : memref<64x128xf32, #tpu.memory_space<vmem>>, vector<8x128xf32>
    tpu.vector_store %arg8[%327, %c0_84], %326 {strides = array<i32>} : memref<64x128xf32, #tpu.memory_space<vmem>>, vector<8x128xf32>,
    %c3_i32_85 = arith.constant 3 : i32
    %c8_i32_86 = arith.constant 8 : i32
    %329 = arith.muli %c3_i32_85, %c8_i32_86 : i32
    %330 = tpu.assume_multiple %329, 8 : i32
    %331 = arith.index_cast %330 : i32 to index
    %c0_87 = arith.constant 0 : index
    %332 = vector.load %arg7[%331, %c0_87] : memref<64x384xf32, #tpu.memory_space<vmem>>, vector<8x384xf32>
    %333 = vector.extract_strided_slice %326 {offsets = [0, 0], sizes = [8, 32], strides = [1, 1]} : vector<8x128xf32> to vector<8x32xf32>
    %cst_88 = arith.constant dense<0.000000e+00> : vector<8x384xf32>
    %334 = tpu.matmul %333, %243, %cst_88 {dimension_numbers = #tpu.dot_dimension_numbers<[1], [0], [0], [1], [0, 0, 1, 1], [], []>} : vector<8x32xf32>, vector<32x384xf32>, vector<8x384xf32> -> vector<8x384xf32>
    %335 = vector.extract_strided_slice %332 {offsets = [0, 0], sizes = [8, 256], strides = [1, 1]} : vector<8x384xf32> to vector<8x256xf32>
    %336 = vector.extract_strided_slice %334 {offsets = [0, 0], sizes = [8, 256], strides = [1, 1]} : vector<8x384xf32> to vector<8x256xf32>
    %337 = arith.addf %335, %336 : vector<8x256xf32>
    %338 = arith.negf %337 : vector<8x256xf32>
    %339 = math.exp %338 : vector<8x256xf32>
    %cst_89 = arith.constant 1.000000e+00 : f32
    %340 = vector.broadcast %cst_89 : f32 to vector<8x256xf32>
    %341 = arith.addf %340, %339 : vector<8x256xf32>
    %342 = arith.divf %340, %341 : vector<8x256xf32>
    %343 = vector.extract_strided_slice %342 {offsets = [0, 0], sizes = [8, 128], strides = [1, 1]} : vector<8x256xf32> to vector<8x128xf32>
    %344 = vector.extract_strided_slice %342 {offsets = [0, 128], sizes = [8, 128], strides = [1, 1]} : vector<8x256xf32> to vector<8x128xf32>
    %345 = vector.extract_strided_slice %332 {offsets = [0, 256], sizes = [8, 128], strides = [1, 1]} : vector<8x384xf32> to vector<8x128xf32>
    %346 = vector.extract_strided_slice %334 {offsets = [0, 256], sizes = [8, 128], strides = [1, 1]} : vector<8x384xf32> to vector<8x128xf32>
    %347 = arith.addf %346, %246 : vector<8x128xf32>
    %348 = arith.mulf %343, %347 : vector<8x128xf32>
    %349 = arith.addf %345, %348 : vector<8x128xf32>
    %350 = math.tanh %349 : vector<8x128xf32>
    %351 = arith.subf %326, %350 : vector<8x128xf32>
    %352 = arith.mulf %344, %351 : vector<8x128xf32>
    %353 = arith.addf %350, %352 : vector<8x128xf32>
    %354 = arith.index_cast %330 : i32 to index
    %c0_90 = arith.constant 0 : index
    %355 = vector.load %arg8[%354, %c0_90] : memref<64x128xf32, #tpu.memory_space<vmem>>, vector<8x128xf32>
    tpu.vector_store %arg8[%354, %c0_90], %353 {strides = array<i32>} : memref<64x128xf32, #tpu.memory_space<vmem>>, vector<8x128xf32>,
    %c4_i32_91 = arith.constant 4 : i32
    %c8_i32_92 = arith.constant 8 : i32
    %356 = arith.muli %c4_i32_91, %c8_i32_92 : i32
    %357 = tpu.assume_multiple %356, 8 : i32
    %358 = arith.index_cast %357 : i32 to index
    %c0_93 = arith.constant 0 : index
    %359 = vector.load %arg7[%358, %c0_93] : memref<64x384xf32, #tpu.memory_space<vmem>>, vector<8x384xf32>
    %360 = vector.extract_strided_slice %353 {offsets = [0, 0], sizes = [8, 32], strides = [1, 1]} : vector<8x128xf32> to vector<8x32xf32>
    %cst_94 = arith.constant dense<0.000000e+00> : vector<8x384xf32>
    %361 = tpu.matmul %360, %243, %cst_94 {dimension_numbers = #tpu.dot_dimension_numbers<[1], [0], [0], [1], [0, 0, 1, 1], [], []>} : vector<8x32xf32>, vector<32x384xf32>, vector<8x384xf32> -> vector<8x384xf32>
    %362 = vector.extract_strided_slice %359 {offsets = [0, 0], sizes = [8, 256], strides = [1, 1]} : vector<8x384xf32> to vector<8x256xf32>
    %363 = vector.extract_strided_slice %361 {offsets = [0, 0], sizes = [8, 256], strides = [1, 1]} : vector<8x384xf32> to vector<8x256xf32>
    %364 = arith.addf %362, %363 : vector<8x256xf32>
    %365 = arith.negf %364 : vector<8x256xf32>
    %366 = math.exp %365 : vector<8x256xf32>
    %cst_95 = arith.constant 1.000000e+00 : f32
    %367 = vector.broadcast %cst_95 : f32 to vector<8x256xf32>
    %368 = arith.addf %367, %366 : vector<8x256xf32>
    %369 = arith.divf %367, %368 : vector<8x256xf32>
    %370 = vector.extract_strided_slice %369 {offsets = [0, 0], sizes = [8, 128], strides = [1, 1]} : vector<8x256xf32> to vector<8x128xf32>
    %371 = vector.extract_strided_slice %369 {offsets = [0, 128], sizes = [8, 128], strides = [1, 1]} : vector<8x256xf32> to vector<8x128xf32>
    %372 = vector.extract_strided_slice %359 {offsets = [0, 256], sizes = [8, 128], strides = [1, 1]} : vector<8x384xf32> to vector<8x128xf32>
    %373 = vector.extract_strided_slice %361 {offsets = [0, 256], sizes = [8, 128], strides = [1, 1]} : vector<8x384xf32> to vector<8x128xf32>
    %374 = arith.addf %373, %246 : vector<8x128xf32>
    %375 = arith.mulf %370, %374 : vector<8x128xf32>
    %376 = arith.addf %372, %375 : vector<8x128xf32>
    %377 = math.tanh %376 : vector<8x128xf32>
    %378 = arith.subf %353, %377 : vector<8x128xf32>
    %379 = arith.mulf %371, %378 : vector<8x128xf32>
    %380 = arith.addf %377, %379 : vector<8x128xf32>
    %381 = arith.index_cast %357 : i32 to index
    %c0_96 = arith.constant 0 : index
    %382 = vector.load %arg8[%381, %c0_96] : memref<64x128xf32, #tpu.memory_space<vmem>>, vector<8x128xf32>
    tpu.vector_store %arg8[%381, %c0_96], %380 {strides = array<i32>} : memref<64x128xf32, #tpu.memory_space<vmem>>, vector<8x128xf32>,
    %c5_i32_97 = arith.constant 5 : i32
    %c8_i32_98 = arith.constant 8 : i32
    %383 = arith.muli %c5_i32_97, %c8_i32_98 : i32
    %384 = tpu.assume_multiple %383, 8 : i32
    %385 = arith.index_cast %384 : i32 to index
    %c0_99 = arith.constant 0 : index
    %386 = vector.load %arg7[%385, %c0_99] : memref<64x384xf32, #tpu.memory_space<vmem>>, vector<8x384xf32>
    %387 = vector.extract_strided_slice %380 {offsets = [0, 0], sizes = [8, 32], strides = [1, 1]} : vector<8x128xf32> to vector<8x32xf32>
    %cst_100 = arith.constant dense<0.000000e+00> : vector<8x384xf32>
    %388 = tpu.matmul %387, %243, %cst_100 {dimension_numbers = #tpu.dot_dimension_numbers<[1], [0], [0], [1], [0, 0, 1, 1], [], []>} : vector<8x32xf32>, vector<32x384xf32>, vector<8x384xf32> -> vector<8x384xf32>
    %389 = vector.extract_strided_slice %386 {offsets = [0, 0], sizes = [8, 256], strides = [1, 1]} : vector<8x384xf32> to vector<8x256xf32>
    %390 = vector.extract_strided_slice %388 {offsets = [0, 0], sizes = [8, 256], strides = [1, 1]} : vector<8x384xf32> to vector<8x256xf32>
    %391 = arith.addf %389, %390 : vector<8x256xf32>
    %392 = arith.negf %391 : vector<8x256xf32>
    %393 = math.exp %392 : vector<8x256xf32>
    %cst_101 = arith.constant 1.000000e+00 : f32
    %394 = vector.broadcast %cst_101 : f32 to vector<8x256xf32>
    %395 = arith.addf %394, %393 : vector<8x256xf32>
    %396 = arith.divf %394, %395 : vector<8x256xf32>
    %397 = vector.extract_strided_slice %396 {offsets = [0, 0], sizes = [8, 128], strides = [1, 1]} : vector<8x256xf32> to vector<8x128xf32>
    %398 = vector.extract_strided_slice %396 {offsets = [0, 128], sizes = [8, 128], strides = [1, 1]} : vector<8x256xf32> to vector<8x128xf32>
    %399 = vector.extract_strided_slice %386 {offsets = [0, 256], sizes = [8, 128], strides = [1, 1]} : vector<8x384xf32> to vector<8x128xf32>
    %400 = vector.extract_strided_slice %388 {offsets = [0, 256], sizes = [8, 128], strides = [1, 1]} : vector<8x384xf32> to vector<8x128xf32>
    %401 = arith.addf %400, %246 : vector<8x128xf32>
    %402 = arith.mulf %397, %401 : vector<8x128xf32>
    %403 = arith.addf %399, %402 : vector<8x128xf32>
    %404 = math.tanh %403 : vector<8x128xf32>
    %405 = arith.subf %380, %404 : vector<8x128xf32>
    %406 = arith.mulf %398, %405 : vector<8x128xf32>
    %407 = arith.addf %404, %406 : vector<8x128xf32>
    %408 = arith.index_cast %384 : i32 to index
    %c0_102 = arith.constant 0 : index
    %409 = vector.load %arg8[%408, %c0_102] : memref<64x128xf32, #tpu.memory_space<vmem>>, vector<8x128xf32>
    tpu.vector_store %arg8[%408, %c0_102], %407 {strides = array<i32>} : memref<64x128xf32, #tpu.memory_space<vmem>>, vector<8x128xf32>,
    %c6_i32_103 = arith.constant 6 : i32
    %c8_i32_104 = arith.constant 8 : i32
    %410 = arith.muli %c6_i32_103, %c8_i32_104 : i32
    %411 = tpu.assume_multiple %410, 8 : i32
    %412 = arith.index_cast %411 : i32 to index
    %c0_105 = arith.constant 0 : index
    %413 = vector.load %arg7[%412, %c0_105] : memref<64x384xf32, #tpu.memory_space<vmem>>, vector<8x384xf32>
    %414 = vector.extract_strided_slice %407 {offsets = [0, 0], sizes = [8, 32], strides = [1, 1]} : vector<8x128xf32> to vector<8x32xf32>
    %cst_106 = arith.constant dense<0.000000e+00> : vector<8x384xf32>
    %415 = tpu.matmul %414, %243, %cst_106 {dimension_numbers = #tpu.dot_dimension_numbers<[1], [0], [0], [1], [0, 0, 1, 1], [], []>} : vector<8x32xf32>, vector<32x384xf32>, vector<8x384xf32> -> vector<8x384xf32>
    %416 = vector.extract_strided_slice %413 {offsets = [0, 0], sizes = [8, 256], strides = [1, 1]} : vector<8x384xf32> to vector<8x256xf32>
    %417 = vector.extract_strided_slice %415 {offsets = [0, 0], sizes = [8, 256], strides = [1, 1]} : vector<8x384xf32> to vector<8x256xf32>
    %418 = arith.addf %416, %417 : vector<8x256xf32>
    %419 = arith.negf %418 : vector<8x256xf32>
    %420 = math.exp %419 : vector<8x256xf32>
    %cst_107 = arith.constant 1.000000e+00 : f32
    %421 = vector.broadcast %cst_107 : f32 to vector<8x256xf32>
    %422 = arith.addf %421, %420 : vector<8x256xf32>
    %423 = arith.divf %421, %422 : vector<8x256xf32>
    %424 = vector.extract_strided_slice %423 {offsets = [0, 0], sizes = [8, 128], strides = [1, 1]} : vector<8x256xf32> to vector<8x128xf32>
    %425 = vector.extract_strided_slice %423 {offsets = [0, 128], sizes = [8, 128], strides = [1, 1]} : vector<8x256xf32> to vector<8x128xf32>
    %426 = vector.extract_strided_slice %413 {offsets = [0, 256], sizes = [8, 128], strides = [1, 1]} : vector<8x384xf32> to vector<8x128xf32>
    %427 = vector.extract_strided_slice %415 {offsets = [0, 256], sizes = [8, 128], strides = [1, 1]} : vector<8x384xf32> to vector<8x128xf32>
    %428 = arith.addf %427, %246 : vector<8x128xf32>
    %429 = arith.mulf %424, %428 : vector<8x128xf32>
    %430 = arith.addf %426, %429 : vector<8x128xf32>
    %431 = math.tanh %430 : vector<8x128xf32>
    %432 = arith.subf %407, %431 : vector<8x128xf32>
    %433 = arith.mulf %425, %432 : vector<8x128xf32>
    %434 = arith.addf %431, %433 : vector<8x128xf32>
    %435 = arith.index_cast %411 : i32 to index
    %c0_108 = arith.constant 0 : index
    %436 = vector.load %arg8[%435, %c0_108] : memref<64x128xf32, #tpu.memory_space<vmem>>, vector<8x128xf32>
    tpu.vector_store %arg8[%435, %c0_108], %434 {strides = array<i32>} : memref<64x128xf32, #tpu.memory_space<vmem>>, vector<8x128xf32>,
    %c7_i32_109 = arith.constant 7 : i32
    %c8_i32_110 = arith.constant 8 : i32
    %437 = arith.muli %c7_i32_109, %c8_i32_110 : i32
    %438 = tpu.assume_multiple %437, 8 : i32
    %439 = arith.index_cast %438 : i32 to index
    %c0_111 = arith.constant 0 : index
    %440 = vector.load %arg7[%439, %c0_111] : memref<64x384xf32, #tpu.memory_space<vmem>>, vector<8x384xf32>
    %441 = vector.extract_strided_slice %434 {offsets = [0, 0], sizes = [8, 32], strides = [1, 1]} : vector<8x128xf32> to vector<8x32xf32>
    %cst_112 = arith.constant dense<0.000000e+00> : vector<8x384xf32>
    %442 = tpu.matmul %441, %243, %cst_112 {dimension_numbers = #tpu.dot_dimension_numbers<[1], [0], [0], [1], [0, 0, 1, 1], [], []>} : vector<8x32xf32>, vector<32x384xf32>, vector<8x384xf32> -> vector<8x384xf32>
    %443 = vector.extract_strided_slice %440 {offsets = [0, 0], sizes = [8, 256], strides = [1, 1]} : vector<8x384xf32> to vector<8x256xf32>
    %444 = vector.extract_strided_slice %442 {offsets = [0, 0], sizes = [8, 256], strides = [1, 1]} : vector<8x384xf32> to vector<8x256xf32>
    %445 = arith.addf %443, %444 : vector<8x256xf32>
    %446 = arith.negf %445 : vector<8x256xf32>
    %447 = math.exp %446 : vector<8x256xf32>
    %cst_113 = arith.constant 1.000000e+00 : f32
    %448 = vector.broadcast %cst_113 : f32 to vector<8x256xf32>
    %449 = arith.addf %448, %447 : vector<8x256xf32>
    %450 = arith.divf %448, %449 : vector<8x256xf32>
    %451 = vector.extract_strided_slice %450 {offsets = [0, 0], sizes = [8, 128], strides = [1, 1]} : vector<8x256xf32> to vector<8x128xf32>
    %452 = vector.extract_strided_slice %450 {offsets = [0, 128], sizes = [8, 128], strides = [1, 1]} : vector<8x256xf32> to vector<8x128xf32>
    %453 = vector.extract_strided_slice %440 {offsets = [0, 256], sizes = [8, 128], strides = [1, 1]} : vector<8x384xf32> to vector<8x128xf32>
    %454 = vector.extract_strided_slice %442 {offsets = [0, 256], sizes = [8, 128], strides = [1, 1]} : vector<8x384xf32> to vector<8x128xf32>
    %455 = arith.addf %454, %246 : vector<8x128xf32>
    %456 = arith.mulf %451, %455 : vector<8x128xf32>
    %457 = arith.addf %453, %456 : vector<8x128xf32>
    %458 = math.tanh %457 : vector<8x128xf32>
    %459 = arith.subf %434, %458 : vector<8x128xf32>
    %460 = arith.mulf %452, %459 : vector<8x128xf32>
    %461 = arith.addf %458, %460 : vector<8x128xf32>
    %462 = arith.index_cast %438 : i32 to index
    %c0_114 = arith.constant 0 : index
    %463 = vector.load %arg8[%462, %c0_114] : memref<64x128xf32, #tpu.memory_space<vmem>>, vector<8x128xf32>
    tpu.vector_store %arg8[%462, %c0_114], %461 {strides = array<i32>} : memref<64x128xf32, #tpu.memory_space<vmem>>, vector<8x128xf32>,
    %c8_i32_115 = arith.constant 8 : i32
    %c0_116 = arith.constant 0 : index
    %c0_117 = arith.constant 0 : index
    %464 = vector.load %arg8[%c0_116, %c0_117] : memref<64x128xf32, #tpu.memory_space<vmem>>, vector<64x128xf32>
    %c0_118 = arith.constant 0 : index
    %c0_119 = arith.constant 0 : index
    %465 = vector.load %arg4[%c0_118, %c0_119] : memref<128x128xf32, #tpu.memory_space<vmem>>, vector<128x128xf32>
    %cst_120 = arith.constant dense<0.000000e+00> : vector<64x128xf32>
    %466 = tpu.matmul %464, %465, %cst_120 {dimension_numbers = #tpu.dot_dimension_numbers<[1], [0], [0], [1], [0, 0, 1, 1], [], []>} : vector<64x128xf32>, vector<128x128xf32>, vector<64x128xf32> -> vector<64x128xf32>
    %c0_121 = arith.constant 0 : index
    %c0_122 = arith.constant 0 : index
    %467 = vector.load %arg5[%c0_121, %c0_122] : memref<1x128xf32, #tpu.memory_space<vmem>>, vector<1x128xf32>
    %468 = vector.broadcast %467 : vector<1x128xf32> to vector<64x128xf32>
    %469 = arith.addf %466, %468 : vector<64x128xf32>
    %470 = arith.negf %469 : vector<64x128xf32>
    %471 = math.exp %470 : vector<64x128xf32>
    %cst_123 = arith.constant 1.000000e+00 : f32
    %472 = vector.broadcast %cst_123 : f32 to vector<64x128xf32>
    %473 = arith.addf %472, %471 : vector<64x128xf32>
    %474 = arith.divf %472, %473 : vector<64x128xf32>
    %c0_124 = arith.constant 0 : index
    %c0_125 = arith.constant 0 : index
    %475 = vector.load %arg6[%c0_124, %c0_125] : memref<64x128xf32, #tpu.memory_space<vmem>>, vector<64x128xf32>
    tpu.vector_store %arg6[%c0_124, %c0_125], %474 {strides = array<i32>} : memref<64x128xf32, #tpu.memory_space<vmem>>, vector<64x128xf32>,
    return
  }
}

</mosaic_0001>

<bundles_post_ra>
// kernel: _lambda_.1
= control target key start
LH: loop header
LB: loop body
LE: loop exit
PB: predicated region body
PF: predicated region fallthrough
CT: control target
= control target key end

     0   :  { %11 = vsyncpa [#allocation5], 0  ;;  %s5609_s0 = inlined_call_operand.vmem [shape: f32[64,128], index: 0, kind: input, shape index: {}]   ;;  %s5610_s1 = inlined_call_operand.hbm [shape: f32[2,128,384], index: 1, kind: input, shape index: {}]   ;;  %s5611_s2 = inlined_call_operand.hbm [shape: f32[2,32,384], index: 2, kind: input, shape index: {}]   ;;  %s5612_s3 = inlined_call_operand.vmem [shape: f32[2,2,384], index: 3, kind: input, shape index: {}]   ;;  %s5613_s4 = inlined_call_operand.vmem [shape: f32[128,128], index: 4, kind: input, shape index: {}]   ;;  %s5614_s5 = inlined_call_operand.vmem [shape: f32[1,128], index: 5, kind: input, shape index: {}]   ;;  %s5615_s6 = inlined_call_operand.vmem [shape: f32[64,128], index: 6, kind: output, shape index: {}]  }
   0x1   :  { %12 = vsyncpa [#allocation7], 0  ;;  %s4919_s21 = smov [#allocation4]   ;;  %s4871_s25 = scalar_lea.hbm %s5610_s1, 12288 }
   0x2   :  { %s20_s22 = sshll.u32 %s4919_s21, 4  ;;  %p4872_p0 = scmp.ne.s32.totalorder %s5610_s1, %s4871_s25  ;;  %s21_s22 = int_to_ptr.vmem [resolvable:$true] %s20_s22 }
   0x3   :  { %p4875_p1 = scmp.lt.u32.totalorder %s4871_s25, %s5610_s1 }
   0x5   :  { %p4877_p2 = pnand %p4875_p1, %p4872_p0 }
   0x7   :  { %4880 = shalt.err (!%p4877_p2)
}
   0x8   :  { %s4881_s30 = scalar_lea.vmem %s21_s22, 12288  ;;  %p4886_p4 = scmp.lt.s32.totalorder %s21_s22, %s21_s22 }
   0x9   :  { %p4882_p3 = scmp.ne.s32.totalorder %s21_s22, %s4881_s30  ;;  %p4887_p5 = scmp.lt.s32.totalorder %s4881_s30, %s4881_s30 }
   0xb   :  { %p4888_p6 = por %p4887_p5, %p4886_p4 }
   0xd   :  { %p4889_p7 = pnand %p4888_p6, %p4882_p3 }
   0xf   :  { %4892 = shalt.err (!%p4889_p7)
}
  0x10   :  { %s4920_s7 = smov 384   ;;  %s4921_s8 = smov 24  }
  0x11   :  { %26 = dma.hbm_to_vmem [thread:$0]  %s5610_s1, 12288, %s21_s22, [#allocation5], %s4920_s7, %s4920_s7, %s4921_s8  }
  0x12   :  { %s4922_s11 = smov [#allocation6]   ;;  %s4893_s15 = scalar_lea.hbm %s5611_s2, 3072 }
  0x13   :  { %s32_s12 = sshll.u32 %s4922_s11, 4  ;;  %p4894_p8 = scmp.ne.s32.totalorder %s5611_s2, %s4893_s15  ;;  %s33_s12 = int_to_ptr.vmem [resolvable:$true] %s32_s12 }
  0x14   :  { %p4897_p9 = scmp.lt.u32.totalorder %s4893_s15, %s5611_s2 }
  0x16   :  { %p4899_p10 = pnand %p4897_p9, %p4894_p8 }
  0x18   :  { %4902 = shalt.err (!%p4899_p10)
}
  0x19   :  { %s4903_s20 = scalar_lea.vmem %s33_s12, 3072  ;;  %p4908_p12 = scmp.lt.s32.totalorder %s33_s12, %s33_s12 }
  0x1a   :  { %p4904_p11 = scmp.ne.s32.totalorder %s33_s12, %s4903_s20  ;;  %p4909_p13 = scmp.lt.s32.totalorder %s4903_s20, %s4903_s20 }
  0x1c   :  { %p4910_p0 = por %p4909_p13, %p4908_p12 }
  0x1e   :  { %p4911_p1 = pnand %p4910_p0, %p4904_p11 }
  0x20   :  { %4914 = shalt.err (!%p4911_p1)
}
  0x21   :  { %38 = dma.hbm_to_vmem [thread:$0]  %s5611_s2, 3072, %s33_s12, [#allocation7], %s4920_s7, %s4920_s7, %s4921_s8  }
  0x22   :  { %4915 = dma.done.wait [#allocation5], 12288  }
  0x23   :  { %4916 = vsyncadd [#allocation5], 4294955008 }
  0x24   :  { %4917 = dma.done.wait [#allocation7], 3072  }
  0x25   :  { %4918 = vsyncadd [#allocation7], 4294964224  ;;  %v4923_v0 = vmov 0.0   ;;  %v61_v1 = vld [vmem:[#allocation4 + $0x8] sm:$0xff]  ;;  %v64_v2 = vld [vmem:[#allocation4 + $0x20] sm:$0xff]  ;;  %vm4925_vm0 = vmmov 0  }
  0x26   :  { %200 = vmatprep.mubr.f32.mxu0 %v4923_v0  ;;  %v60_v3 = vld [vmem:[#allocation4] sm:$0xff]  ;;  %v4208_v4 = vpack.c.bf16 %v64_v2, %v61_v1  ;;  %v63_v5 = vld [vmem:[#allocation4 + $0x18] sm:$0xff]  ;;  %v70_v7 = vld [vmem:[#allocation4 + $0x50] sm:$0xff]  ;;  %vm400_vm1 = vcmask 261120  }
  0x27   :  { %v67_v6 = vld [vmem:[#allocation4 + $0x38] sm:$0xff]  ;;  %v4210_v8 = vpack.c.bf16 %v63_v5, %v60_v3  ;;  %v66_v10 = vld [vmem:[#allocation4 + $0x30] sm:$0xff]  ;;  %v69_v11 = vld [vmem:[#allocation4 + $0x48] sm:$0xff] }
  0x28   :  { %v4212_v9 = vpack.c.bf16 %v70_v7, %v67_v6  ;;  %v73_v12 = vld [vmem:[#allocation4 + $0x68] sm:$0xff]  ;;  %4209 = vmatprep.subr.bf16.mxu0 %v4208_v4  ;;  %v76_v13 = vld [vmem:[#allocation4 + $0x80] sm:$0xff]  ;;  %v4214_v14 = vpack.c.bf16 %v69_v11, %v66_v10  ;;  %v75_v17 = vld [vmem:[#allocation4 + $0x78] sm:$0xff] }
  0x29   :  { %4211 = vmatpush1.bf16.msra.mxu0 %v4210_v8  ;;  %v4216_v15 = vpack.c.bf16 %v76_v13, %v73_v12  ;;  %v72_v16 = vld [vmem:[#allocation4 + $0x60] sm:$0xff]  ;;  %v79_v18 = vld [vmem:[#allocation4 + $0x98] sm:$0xff]  ;;  %v82_v19 = vld [vmem:[#allocation4 + $0xb0] sm:$0xff] }
  0x2a   :  { %4213 = vmatprep.subr.bf16.mxu0 %v4212_v9  ;;  %v4218_v20 = vpack.c.bf16 %v75_v17, %v72_v16  ;;  %v4220_v21 = vpack.c.bf16 %v82_v19, %v79_v18  ;;  %v78_v22 = vld [vmem:[#allocation4 + $0x90] sm:$0xff]  ;;  %v81_v23 = vld [vmem:[#allocation4 + $0xa8] sm:$0xff]  ;;  %v88_v25 = vld [vmem:[#allocation4 + $0xe0] sm:$0xff] }
  0x2b   :  { %v85_v24 = vld [vmem:[#allocation4 + $0xc8] sm:$0xff]  ;;  %v62_v26 = vld [vmem:[#allocation4 + $0x10] sm:$0xff]  ;;  %v4222_v28 = vpack.c.bf16 %v81_v23, %v78_v22  ;;  %v68_v30 = vld [vmem:[#allocation4 + $0x40] sm:$0xff] }
  0x2c   :  { %v65_v27 = vld [vmem:[#allocation4 + $0x28] sm:$0xff]  ;;  %v71_v31 = vld [vmem:[#allocation4 + $0x58] sm:$0xff]  ;;  %v4224_v32 = vpack.c.bf16 %v88_v25, %v85_v24  ;;  %v84_v33 = vld [vmem:[#allocation4 + $0xc0] sm:$0xff] }
  0x2d   :  { %4215 = vmatpush1.bf16.msra.mxu0 %v4214_v14  ;;  %v4986_v29 = vpack.c.bf16 %v65_v27, %v62_v26  ;;  %v87_v34 = vld [vmem:[#allocation4 + $0xd8] sm:$0xff]  ;;  %v94_v36 = vld [vmem:[#allocation4 + $0x110] sm:$0xff]  ;;  %v4988_v37 = vpack.c.bf16 %v71_v31, %v68_v30  ;;  %v4993_v38 = vld [vmem:[%s5609_s0 + $0x20] sm:$0xff] }
  0x2e   :  { %4217 = vmatprep.subr.bf16.mxu0 %v4216_v15  ;;  %v91_v35 = vld [vmem:[#allocation4 + $0xf8] sm:$0xff]  ;;  %v74_v39 = vld [vmem:[#allocation4 + $0x70] sm:$0xff]  ;;  %v77_v40 = vld [vmem:[#allocation4 + $0x88] sm:$0xff]  ;;  %3938 = vmatprep.mubr.f32.mxu1 %v4993_v38  ;;  %v4226_v41 = vpack.c.bf16 %v87_v34, %v84_v33 }
  0x2f   :  { %4592 = vmatprep.subr.bf16.mxu1 %v4986_v29  ;;  %v4228_v42 = vpack.c.bf16 %v94_v36, %v91_v35  ;;  %v90_v43 = vld [vmem:[#allocation4 + $0xf0] sm:$0xff]  ;;  %v93_v44 = vld [vmem:[#allocation4 + $0x108] sm:$0xff]  ;;  %v100_v46 = vld [vmem:[#allocation4 + $0x140] sm:$0xff]  ;;  %v4999_v47 = vpack.c.bf16 %v77_v40, %v74_v39 }
  0x30   :  { %4600 = vmatpush3.bf16.msra.mxu1 %v4986_v29  ;;  %v97_v45 = vld [vmem:[#allocation4 + $0x128] sm:$0xff]  ;;  %v80_v48 = vld [vmem:[#allocation4 + $0xa0] sm:$0xff]  ;;  %v83_v49 = vld [vmem:[#allocation4 + $0xb8] sm:$0xff]  ;;  %v4230_v50 = vpack.c.bf16 %v93_v44, %v90_v43 }
  0x31   :  { %4219 = vmatpush1.bf16.msra.mxu0 %v4218_v20  ;;  %4593 = vmatprep.subr.bf16.mxu1 %v4988_v37  ;;  %v4232_v51 = vpack.c.bf16 %v100_v46, %v97_v45  ;;  %v96_v52 = vld [vmem:[#allocation4 + $0x120] sm:$0xff]  ;;  %v99_v53 = vld [vmem:[#allocation4 + $0x138] sm:$0xff]  ;;  %v106_v55 = vld [vmem:[#allocation4 + $0x170] sm:$0xff]  ;;  %v5003_v56 = vpack.c.bf16 %v83_v49, %v80_v48 }
  0x32   :  { %4221 = vmatprep.subr.bf16.mxu0 %v4220_v21  ;;  %v103_v54 = vld [vmem:[#allocation4 + $0x158] sm:$0xff]  ;;  %v86_v57 = vld [vmem:[#allocation4 + $0xd0] sm:$0xff]  ;;  %v89_v58 = vld [vmem:[#allocation4 + $0xe8] sm:$0xff]  ;;  %v4234_v59 = vpack.c.bf16 %v99_v53, %v96_v52  ;;  %v4924_v21 = vmov 0.0|0.0  }
  0x33   :  { %v4236_v60 = vpack.c.bf16 %v106_v55, %v103_v54  ;;  %v102_v61 = vld [vmem:[#allocation4 + $0x150] sm:$0xff]  ;;  %v105_v62 = vld [vmem:[#allocation4 + $0x168] sm:$0xff]  ;;  %v4256_v63 = vpack.c.bf16 %v89_v58, %v86_v57  ;;  %v92_v1 = vld [vmem:[#allocation4 + $0x100] sm:$0xff] }
  0x34   :  { %4601 = vmatpush3.bf16.msra.mxu1 %v4988_v37  ;;  %v95_v2 = vld [vmem:[#allocation4 + $0x118] sm:$0xff]  ;;  %v4238_v3 = vpack.c.bf16 %v105_v62, %v102_v61  ;;  %v5011_v5 = vld [vmem:[%s5609_s0] sm:$0xff]  ;;  %v98_v6 = vld [vmem:[#allocation4 + $0x130] sm:$0xff] }
  0x35   :  { %4223 = vmatpush1.bf16.msra.mxu0 %v4222_v28  ;;  %4594 = vmatprep.subr.bf16.mxu1 %v4999_v47  ;;  %v4260_v4 = vpack.c.bf16 %v95_v2, %v92_v1  ;;  %v101_v7 = vld [vmem:[#allocation4 + $0x148] sm:$0xff]  ;;  %v104_v10 = vld [vmem:[#allocation4 + $0x160] sm:$0xff]  ;;  %v107_v11 = vld [vmem:[#allocation4 + $0x178] sm:$0xff] }
  0x36   :  { %4225 = vmatprep.subr.bf16.mxu0 %v4224_v32  ;;  %v4264_v8 = vpack.c.bf16 %v101_v7, %v98_v6  ;;  %v5020_v9 = vld [vmem:[%s5609_s0 + $0x8] sm:$0xff]  ;;  %v4268_v12 = vpack.c.bf16 %v107_v11, %v104_v10  ;;  %v5029_v13 = vld [vmem:[%s5609_s0 + $0x10] sm:$0xff]  ;;  %v55_v17 = vld [vmem:[%s5609_s0 + $0x18] sm:$0xff] }
  0x37   :  { %v380_v14 = vld [vmem:[#allocation6 + $0x10] sm:$0xff]  ;;  %v383_v15 = vld [vmem:[#allocation6 + $0x28] sm:$0xff]  ;;  %v386_v18 = vld [vmem:[#allocation6 + $0x40] sm:$0xff] }
  0x38   :  { %4602 = vmatpush3.bf16.msra.mxu1 %v4999_v47  ;;  %v5033_v16 = vpack.c.bf16 %v383_v15, %v380_v14  ;;  %v389_v19 = vld [vmem:[#allocation6 + $0x58] sm:$0xff]  ;;  %v57_v20 = vld [vmem:[%s5609_s0 + $0x28] sm:$0xff]  ;;  %v58_v23 = vld [vmem:[%s5609_s0 + $0x30] sm:$0xff] }
  0x39   :  { %4227 = vmatpush1.bf16.msra.mxu0 %v4226_v41  ;;  %4595 = vmatprep.subr.bf16.mxu1 %v5003_v56  ;;  %v5046_v22 = vpack.c.bf16 %v389_v19, %v386_v18  ;;  %v59_v24 = vld [vmem:[%s5609_s0 + $0x38] sm:$0xff]  ;;  %v379_v25 = vld [vmem:[#allocation6 + $0x8] sm:$0xff]  ;;  %v382_v26 = vld [vmem:[#allocation6 + $0x20] sm:$0xff] }
  0x3a   :  { %4229 = vmatprep.subr.bf16.mxu0 %v4228_v42  ;;  %v5071_v27 = vpack.c.bf16 %v382_v26, %v379_v25  ;;  %v378_v28 = vld [vmem:[#allocation6] sm:$0xff]  ;;  %v385_v30 = vld [vmem:[#allocation6 + $0x38] sm:$0xff]  ;;  %v388_v31 = vld [vmem:[#allocation6 + $0x50] sm:$0xff] }
  0x3b   :  { %v5078_v33 = vpack.c.bf16 %v388_v31, %v385_v30  ;;  %v384_v34 = vld [vmem:[#allocation6 + $0x30] sm:$0xff]  ;;  %v387_v35 = vld [vmem:[#allocation6 + $0x48] sm:$0xff]  ;;  %v51_v40 = vld [vmem:[%s5612_s3] sm:$0x3f] }
  0x3c   :  { %4603 = vmatpush3.bf16.msra.mxu1 %v5003_v56  ;;  %v5083_v36 = vpack.c.bf16 %v387_v35, %v384_v34 }
  0x3d   :  { %4231 = vmatpush1.bf16.msra.mxu0 %v4230_v50  ;;  %4596 = vmatprep.subr.bf16.mxu1 %v4256_v63 }
  0x3e   :  { %4233 = vmatprep.subr.bf16.mxu0 %v4232_v51 }
  0x40   :  { %4604 = vmatpush3.bf16.msra.mxu1 %v4256_v63 }
  0x41   :  { %4235 = vmatpush1.bf16.msra.mxu0 %v4234_v59  ;;  %4597 = vmatprep.subr.bf16.mxu1 %v4260_v4 }
  0x42   :  { %4237 = vmatprep.subr.bf16.mxu0 %v4236_v60 }
  0x44   :  { %4605 = vmatpush3.bf16.msra.mxu1 %v4260_v4 }
  0x45   :  { %4239 = vmatpush1.bf16.msra.mxu0 %v4238_v3  ;;  %4598 = vmatprep.subr.bf16.mxu1 %v4264_v8 }
  0x46   :  { %4241 = vmatprep.subr.bf16.mxu0 %v4986_v29 }
  0x48   :  { %201 = vmatmul.mubr.f32.vlgmr.msra.gmra.mrb[0].mxu0 %v5011_v5  ;;  %4606 = vmatpush3.bf16.msra.mxu1 %v4264_v8 }
  0x49   :  { %4243 = vmatpush3.bf16.msra.mxu0 %v4986_v29  ;;  %206 = vmatprep.mubr.f32.mxu0 %v4923_v0  ;;  %v381_v29 = vld [vmem:[#allocation6 + $0x18] sm:$0xff] }
  0x4a   :  { %4245 = vmatprep.subr.bf16.mxu0 %v4988_v37  ;;  %4599 = vmatprep.subr.bf16.mxu1 %v4268_v12  ;;  %v5075_v32 = vpack.c.bf16 %v381_v29, %v378_v28 }
  0x4c   :  { %207 = vmatmul.mubr.f32.gmra.mrb[2].mxu0 %v5020_v9  ;;  %4607 = vmatpush3.bf16.msra.mxu1 %v4268_v12 }
  0x4d   :  { %4247 = vmatpush3.bf16.msra.mxu0 %v4988_v37  ;;  %212 = vmatprep.mubr.f32.mxu0 %v4923_v0  ;;  %v109_v37 = vlaneseq }
  0x4e   :  { %4249 = vmatprep.subr.bf16.mxu0 %v4999_v47  ;;  %4280 = vmatprep.subr.bf16.mxu1 %v4924_v21 }
  0x4f   :  { %3939 = vmatmul.mubr.f32.vlgmr.msra.gmra.mrb[0].mxu1 %v57_v20 }
  0x50   :  { %213 = vmatmul.mubr.f32.gmra.mrb[4].mxu0 %v5029_v13  ;;  %4282 = vmatpush3.bf16.msra.mxu1 %v5033_v16 }
  0x51   :  { %4251 = vmatpush3.bf16.msra.mxu0 %v4999_v47  ;;  %218 = vmatprep.mubr.f32.mxu0 %v4923_v0 }
  0x52   :  { %4253 = vmatprep.subr.bf16.mxu0 %v5003_v56  ;;  %3941 = vmatprep.mubr.f32.mxu1 %v58_v23 }
  0x53   :  { %3942 = vmatmul.mubr.f32.gmra.mrb[2].mxu1 %v59_v24  ;;  %4283 = vmatprep.subr.bf16.mxu1 %v4924_v21 }
  0x54   :  { %219 = vmatmul.mubr.f32.gmra.mrb[6].mxu0 %v55_v17  ;;  %4285 = vmatpush3.bf16.msra.mxu1 %v5046_v22 }
  0x55   :  { %4255 = vmatpush3.bf16.msra.mxu0 %v5003_v56  ;;  %224 = vmatprep.mubr.f32.mxu0 %v4923_v0 }
  0x56   :  { %4257 = vmatprep.subr.bf16.mxu0 %v4256_v63  ;;  %3952 = vmatprep.mubr.msk.f32.mxu1 %vm4925_vm0, %v4923_v0 }
  0x57   :  { %3953 = vmatmul.mubr.f32.vlgmr.msra.gmra.mrb[4].mxu1 %v4923_v0  ;;  %4294 = vmatprep.subr.bf16.mxu1 %v4924_v21 }
  0x58   :  { %225 = vmatmul.mubr.f32.gmra.mrb[8].mxu0 %v4993_v38  ;;  %4296 = vmatpush3.bf16.msra.mxu1 %v5033_v16  ;;  %v5095_v38 = vshrl.u32 %v109_v37, 7 }
  0x59   :  { %4259 = vmatpush3.bf16.msra.mxu0 %v4256_v63  ;;  %230 = vmatprep.mubr.f32.mxu0 %v4923_v0 }
  0x5a   :  { %4261 = vmatprep.subr.bf16.mxu0 %v4260_v4  ;;  %4297 = vmatprep.subr.bf16.mxu1 %v4924_v21  ;;  %v119_v39 = vsub.s32 4, %v5095_v38  ;;  %v5102_v41 = vsub.s32 0, %v5095_v38  ;;  %v115_v62 = vsub.s32 2, %v5095_v38  ;;  %v392_v11 = vsub.s32 1, %v5095_v38 }
  0x5b   :  { %3963 = vmatprep.mubr.msk.f32.mxu1 %vm4925_vm0, %v4923_v0 }
  0x5c   :  { %231 = vmatmul.mubr.f32.gmra.mrb[10].mxu0 %v57_v20  ;;  %4299 = vmatpush3.bf16.msra.mxu1 %v5046_v22  ;;  %v120_v42 = vrot.slane %v51_v40, %v119_v39  ;;  %v112_v57 = vrot.slane %v51_v40, %v5102_v41  ;;  %v116_v3 = vrot.slane %v51_v40, %v115_v62 }
  0x5d   :  { %4263 = vmatpush3.bf16.msra.mxu0 %v4260_v4  ;;  %236 = vmatprep.mubr.f32.mxu0 %v4923_v0 }
  0x5e   :  { %4265 = vmatprep.subr.bf16.mxu0 %v4264_v8  ;;  %4308 = vmatprep.subr.bf16.mxu1 %v4924_v21  ;;  %v135_v43 = vrot.slane %v120_v42, %v5102_v41  ;;  %v5121_v61 = vrot.slane %v112_v57, %v5102_v41  ;;  %v5130_v6 = vrot.slane %v116_v3, %v5102_v41 }
  0x60   :  { %237 = vmatmul.mubr.f32.gmra.mrb[12].mxu0 %v58_v23 }
  0x61   :  { %4267 = vmatpush3.bf16.msra.mxu0 %v4264_v8  ;;  %242 = vmatprep.mubr.f32.mxu0 %v4923_v0 }
  0x62   :  { %4269 = vmatprep.subr.bf16.mxu0 %v4268_v12 }
  0x64   :  { %243 = vmatmul.mubr.f32.gmra.mrb[14].mxu0 %v59_v24 }
  0x65   :  { %4271 = vmatpush3.bf16.msra.mxu0 %v4268_v12  ;;  %3932 = vmatprep.mubr.f32.mxu0 %v5011_v5  ;;  %v5136_v12 = vrot.slane %v51_v40, %v392_v11 }
  0x66   :  { %4273 = vmatprep.subr.bf16.mxu0 %v5071_v27 }
  0x68   :  { %3933 = vmatmul.mubr.f32.vlgmr.msra.gmra.mrb[16].mxu0 %v5020_v9 }
  0x69   :  { %4275 = vmatpush1.bf16.msra.mxu0 %v5075_v32  ;;  %3935 = vmatprep.mubr.f32.mxu0 %v5029_v13 }
  0x6a   :  { %4277 = vmatprep.subr.bf16.mxu0 %v5078_v33 }
  0x6c   :  { %3936 = vmatmul.mubr.f32.gmra.mrb[18].mxu0 %v55_v17 }
  0x6d   :  { %4279 = vmatpush1.bf16.msra.mxu0 %v5083_v36  ;;  %468 = vmatprep.mubr.f32.mxu0 %v4923_v0 }
  0x6e   :  { %4287 = vmatprep.subr.bf16.mxu0 %v5071_v27 }
  0x70   :  { %469 = vmatmul.mubr.f32.vlgmr.msra.gmra.mrb[0].mxu0 %v4923_v0 }
  0x71   :  { %4289 = vmatpush1.bf16.msra.mxu0 %v5075_v32  ;;  %640 = vmatprep.mubr.f32.mxu0 %v4923_v0 }
  0x72   :  { %4291 = vmatprep.subr.bf16.mxu0 %v5078_v33 }
  0x75   :  { %4293 = vmatpush1.bf16.msra.mxu0 %v5083_v36 }
  0x76   :  { %4301 = vmatprep.subr.bf16.mxu0 %v5071_v27 }
 0x122   :  { %v3940_v44 = vpop.f32.mrb[0].mxu1 }
 0x123   :  { %v5107_v45 = vadd.f32 %v3940_v44, %v135_v43  ;;  %v335_v46 = vpop.f32.mrb[1].mxu1 }
 0x124   :  { %v5109_v47 = vadd.f32 %v335_v46, %v135_v43 }
 0x126   :  { %v3943_v48 = vpop.f32.mrb[2].mxu1 }
 0x127   :  { %v5111_v49 = vadd.f32 %v3943_v48, %v135_v43  ;;  %v345_v50 = vpop.f32.mrb[3].mxu1 }
 0x128   :  { %v5113_v51 = vadd.f32 %v345_v50, %v135_v43 }
 0x12a   :  { %v541_v52 = vpop.f32.mrb[4].mxu1 }
 0x12b   :  { %v3954_v53 = vpop.f32.mrb[5].mxu1  ;;  %v559_v13 = vadd.f32 %v541_v52, %v5136_v12 }
 0x13b   :  { %v3934_v54 = vpop.f32.mrb[16].mxu0 }
 0x13c   :  { %v5115_v55 = vadd.f32 %v3934_v54, %v135_v43  ;;  %v315_v56 = vpop.f32.mrb[17].mxu0 }
 0x13d   :  { %v316_v17 = vadd.f32 %v315_v56, %v135_v43 }
 0x13f   :  { %v3937_v58 = vpop.f32.mrb[18].mxu0 }
 0x140   :  { %v5118_v59 = vadd.f32 %v3937_v58, %v135_v43  ;;  %v325_v60 = vpop.f32.mrb[19].mxu0 }
 0x141   :  { %v5124_v63 = vadd.f32 %v325_v60, %v135_v43 }
 0x143   :  { %v470_v1 = vpop.f32.mrb[0].mxu0 }
 0x144   :  { %v4608_v2 = vadd.f32 %v470_v1, %v5121_v61  ;;  %v472_v4 = vpop.f32.mrb[1].mxu0 }
 0x145   :  { %v4609_v7 = vadd.f32 %v472_v4, %v5130_v6 }
 0x146   :  { %v3678_v5 = vmul.f32 -1.442695, %v4608_v2 }
 0x147   :  { %v3679_v8 = vmul.f32 -1.442695, %v4609_v7 }
 0x148   :  { %4679 = vpow2.f32 %v3678_v5 }
 0x149   :  { %4681 = vpow2.f32 %v3679_v8 }
 0x152   :  { %v4680_v9 = vpop.eup %4679 }
 0x153   :  { %v553_v10 = vadd.f32 1.0, %v4680_v9  ;;  %v4682_v14 = vpop.eup %4681 }
 0x154   :  { %v554_v19 = vadd.f32 1.0, %v4682_v14 }
 0x155   :  { %4683 = vrcp.f32 %v553_v10 }
 0x15f   :  { %v4684_v15 = vpop.eup %4683 }
 0x160   :  { %v560_v18 = vmul.f32 %v4684_v15, %v559_v13 }
 0x162   :  { %v561_v20 = vadd.f32 %v560_v18, %v316_v17 }
 0x164   :  { %4685 = vtanh.f32 %v561_v20 }
 0x165   :  { %4687 = vrcp.f32 %v554_v19 }
 0x16e   :  { %v4686_v23 = vpop.eup %4685 }
 0x16f   :  { %v563_v24 = vsub.f32 0.0, %v4686_v23  ;;  %v4688_v25 = vpop.eup %4687 }
 0x171   :  { %v564_v26 = vmul.f32 %v4688_v25, %v563_v24 }
 0x173   :  { %v5139_v28 = vadd.f32 %v4686_v23, %v564_v26 }
 0x175   :  { %3680 = vmatmul.mubr.msk.f32.vlgmr.msra.gmra.mrb[2].mxu0 %vm400_vm1, %v5139_v28  ;;  %3964 = vmatmul.mubr.msk.f32.vlgmr.msra.gmra.mrb[6].mxu1 %vm400_vm1, %v5139_v28 }
 0x176   :  { %4303 = vmatpush1.bf16.msra.mxu0 %v5075_v32  ;;  %4310 = vmatpush3.bf16.msra.mxu1 %v5033_v16 }
 0x177   :  { %4305 = vmatprep.subr.bf16.mxu0 %v5078_v33  ;;  %4311 = vmatprep.subr.bf16.mxu1 %v4924_v21 }
 0x178   :  { %813 = vmatprep.mubr.f32.mxu0 %v4923_v0  ;;  %3974 = vmatprep.mubr.msk.f32.mxu1 %vm4925_vm0, %v4923_v0 }
 0x17a   :  { %4307 = vmatpush1.bf16.msra.mxu0 %v5083_v36  ;;  %4313 = vmatpush3.bf16.msra.mxu1 %v5046_v22 }
 0x17b   :  { %4315 = vmatprep.subr.bf16.mxu0 %v5071_v27  ;;  %4322 = vmatprep.subr.bf16.mxu1 %v4924_v21 }
 0x248   :  { %v642_v29 = vpop.f32.mrb[2].mxu0  ;;  %v713_v30 = vpop.f32.mrb[6].mxu1 }
 0x249   :  { %v4610_v31 = vadd.f32 %v642_v29, %v5121_v61  ;;  %v644_v34 = vpop.f32.mrb[3].mxu0  ;;  %v3965_v35 = vpop.f32.mrb[7].mxu1  ;;  %v731_v48 = vadd.f32 %v713_v30, %v5136_v12 }
 0x24a   :  { %v4611_v40 = vadd.f32 %v644_v34, %v5130_v6 }
 0x24b   :  { %v3682_v37 = vmul.f32 -1.442695, %v4610_v31 }
 0x24c   :  { %v3683_v42 = vmul.f32 -1.442695, %v4611_v40 }
 0x24d   :  { %4689 = vpow2.f32 %v3682_v37 }
 0x24e   :  { %4691 = vpow2.f32 %v3683_v42 }
 0x257   :  { %v4690_v43 = vpop.eup %4689 }
 0x258   :  { %v725_v44 = vadd.f32 1.0, %v4690_v43  ;;  %v4692_v46 = vpop.eup %4691 }
 0x259   :  { %v726_v54 = vadd.f32 1.0, %v4692_v46 }
 0x25a   :  { %4693 = vrcp.f32 %v725_v44 }
 0x264   :  { %v4694_v50 = vpop.eup %4693 }
 0x265   :  { %v732_v52 = vmul.f32 %v4694_v50, %v731_v48 }
 0x267   :  { %v733_v53 = vadd.f32 %v732_v52, %v5115_v55 }
 0x269   :  { %4695 = vtanh.f32 %v733_v53 }
 0x26a   :  { %4697 = vrcp.f32 %v726_v54 }
 0x273   :  { %v4696_v56 = vpop.eup %4695 }
 0x274   :  { %v735_v57 = vsub.f32 %v5139_v28, %v4696_v56  ;;  %v4698_v58 = vpop.eup %4697 }
 0x276   :  { %v736_v60 = vmul.f32 %v4698_v58, %v735_v57 }
 0x278   :  { %v5161_v1 = vadd.f32 %v4696_v56, %v736_v60 }
 0x27a   :  { %3684 = vmatmul.mubr.msk.f32.vlgmr.msra.gmra.mrb[4].mxu0 %vm400_vm1, %v5161_v1  ;;  %3975 = vmatmul.mubr.msk.f32.vlgmr.msra.gmra.mrb[8].mxu1 %vm400_vm1, %v5161_v1 }
 0x27b   :  { %4317 = vmatpush1.bf16.msra.mxu0 %v5075_v32  ;;  %4324 = vmatpush3.bf16.msra.mxu1 %v5033_v16 }
 0x27c   :  { %4319 = vmatprep.subr.bf16.mxu0 %v5078_v33  ;;  %4325 = vmatprep.subr.bf16.mxu1 %v4924_v21 }
 0x27d   :  { %986 = vmatprep.mubr.f32.mxu0 %v4923_v0  ;;  %3985 = vmatprep.mubr.msk.f32.mxu1 %vm4925_vm0, %v4923_v0 }
 0x27f   :  { %4321 = vmatpush1.bf16.msra.mxu0 %v5083_v36  ;;  %4327 = vmatpush3.bf16.msra.mxu1 %v5046_v22 }
 0x280   :  { %4329 = vmatprep.subr.bf16.mxu0 %v5071_v27  ;;  %4336 = vmatprep.subr.bf16.mxu1 %v4924_v21 }
 0x34d   :  { %v815_v55 = vpop.f32.mrb[4].mxu0  ;;  %v886_v2 = vpop.f32.mrb[8].mxu1 }
 0x34e   :  { %v4612_v3 = vadd.f32 %v815_v55, %v5121_v61  ;;  %v817_v4 = vpop.f32.mrb[5].mxu0  ;;  %v3976_v5 = vpop.f32.mrb[9].mxu1  ;;  %v904_v15 = vadd.f32 %v886_v2, %v5136_v12 }
 0x34f   :  { %v4613_v8 = vadd.f32 %v817_v4, %v5130_v6 }
 0x350   :  { %v3686_v7 = vmul.f32 -1.442695, %v4612_v3 }
 0x351   :  { %v3687_v9 = vmul.f32 -1.442695, %v4613_v8 }
 0x352   :  { %4699 = vpow2.f32 %v3686_v7 }
 0x353   :  { %4701 = vpow2.f32 %v3687_v9 }
 0x35c   :  { %v4700_v10 = vpop.eup %4699 }
 0x35d   :  { %v898_v13 = vadd.f32 1.0, %v4700_v10  ;;  %v4702_v14 = vpop.eup %4701 }
 0x35e   :  { %v899_v20 = vadd.f32 1.0, %v4702_v14 }
 0x35f   :  { %4703 = vrcp.f32 %v898_v13 }
 0x369   :  { %v4704_v17 = vpop.eup %4703 }
 0x36a   :  { %v905_v18 = vmul.f32 %v4704_v17, %v904_v15 }
 0x36c   :  { %v906_v19 = vadd.f32 %v905_v18, %v5124_v63 }
 0x36e   :  { %4705 = vtanh.f32 %v906_v19 }
 0x36f   :  { %4707 = vrcp.f32 %v899_v20 }
 0x378   :  { %v4706_v23 = vpop.eup %4705 }
 0x379   :  { %v908_v24 = vsub.f32 %v5161_v1, %v4706_v23  ;;  %v4708_v25 = vpop.eup %4707 }
 0x37b   :  { %v909_v26 = vmul.f32 %v4708_v25, %v908_v24 }
 0x37d   :  { %v5183_v29 = vadd.f32 %v4706_v23, %v909_v26 }
 0x37f   :  { %3688 = vmatmul.mubr.msk.f32.vlgmr.msra.gmra.mrb[6].mxu0 %vm400_vm1, %v5183_v29  ;;  %3986 = vmatmul.mubr.msk.f32.vlgmr.msra.gmra.mrb[10].mxu1 %vm400_vm1, %v5183_v29 }
 0x380   :  { %4331 = vmatpush1.bf16.msra.mxu0 %v5075_v32  ;;  %4338 = vmatpush3.bf16.msra.mxu1 %v5033_v16 }
 0x381   :  { %4333 = vmatprep.subr.bf16.mxu0 %v5078_v33  ;;  %4339 = vmatprep.subr.bf16.mxu1 %v4924_v21 }
 0x382   :  { %1159 = vmatprep.mubr.f32.mxu0 %v4923_v0  ;;  %3996 = vmatprep.mubr.msk.f32.mxu1 %vm4925_vm0, %v4923_v0 }
 0x384   :  { %4335 = vmatpush1.bf16.msra.mxu0 %v5083_v36  ;;  %4341 = vmatpush3.bf16.msra.mxu1 %v5046_v22 }
 0x385   :  { %4343 = vmatprep.subr.bf16.mxu0 %v5071_v27  ;;  %4350 = vmatprep.subr.bf16.mxu1 %v4924_v21 }
 0x452   :  { %v988_v63 = vpop.f32.mrb[6].mxu0  ;;  %v1059_v30 = vpop.f32.mrb[10].mxu1 }
 0x453   :  { %v4614_v31 = vadd.f32 %v988_v63, %v5121_v61  ;;  %v990_v34 = vpop.f32.mrb[7].mxu0  ;;  %v3987_v35 = vpop.f32.mrb[11].mxu1  ;;  %v1077_v48 = vadd.f32 %v1059_v30, %v5136_v12 }
 0x454   :  { %v4615_v40 = vadd.f32 %v990_v34, %v5130_v6 }
 0x455   :  { %v3690_v37 = vmul.f32 -1.442695, %v4614_v31 }
 0x456   :  { %v3691_v42 = vmul.f32 -1.442695, %v4615_v40 }
 0x457   :  { %4709 = vpow2.f32 %v3690_v37 }
 0x458   :  { %4711 = vpow2.f32 %v3691_v42 }
 0x461   :  { %v4710_v43 = vpop.eup %4709 }
 0x462   :  { %v1071_v44 = vadd.f32 1.0, %v4710_v43  ;;  %v4712_v46 = vpop.eup %4711 }
 0x463   :  { %v1072_v54 = vadd.f32 1.0, %v4712_v46 }
 0x464   :  { %4713 = vrcp.f32 %v1071_v44 }
 0x46e   :  { %v4714_v50 = vpop.eup %4713 }
 0x46f   :  { %v1078_v52 = vmul.f32 %v4714_v50, %v1077_v48 }
 0x471   :  { %v1079_v53 = vadd.f32 %v1078_v52, %v5118_v59 }
 0x473   :  { %4715 = vtanh.f32 %v1079_v53 }
 0x474   :  { %4717 = vrcp.f32 %v1072_v54 }
 0x47d   :  { %v4716_v56 = vpop.eup %4715 }
 0x47e   :  { %v1081_v57 = vsub.f32 %v5183_v29, %v4716_v56  ;;  %v4718_v58 = vpop.eup %4717 }
 0x480   :  { %v1082_v60 = vmul.f32 %v4718_v58, %v1081_v57 }
 0x482   :  { %v5205_v55 = vadd.f32 %v4716_v56, %v1082_v60 }
 0x484   :  { %3692 = vmatmul.mubr.msk.f32.vlgmr.msra.gmra.mrb[8].mxu0 %vm400_vm1, %v5205_v55  ;;  %3997 = vmatmul.mubr.msk.f32.vlgmr.msra.gmra.mrb[12].mxu1 %vm400_vm1, %v5205_v55 }
 0x485   :  { %4345 = vmatpush1.bf16.msra.mxu0 %v5075_v32  ;;  %4352 = vmatpush3.bf16.msra.mxu1 %v5033_v16 }
 0x486   :  { %4347 = vmatprep.subr.bf16.mxu0 %v5078_v33  ;;  %4353 = vmatprep.subr.bf16.mxu1 %v4924_v21 }
 0x487   :  { %1332 = vmatprep.mubr.f32.mxu0 %v4923_v0  ;;  %4007 = vmatprep.mubr.msk.f32.mxu1 %vm4925_vm0, %v4923_v0 }
 0x489   :  { %4349 = vmatpush1.bf16.msra.mxu0 %v5083_v36  ;;  %4355 = vmatpush3.bf16.msra.mxu1 %v5046_v22 }
 0x48a   :  { %4357 = vmatprep.subr.bf16.mxu0 %v5071_v27  ;;  %4364 = vmatprep.subr.bf16.mxu1 %v4924_v21 }
 0x557   :  { %v1161_v59 = vpop.f32.mrb[8].mxu0  ;;  %v1232_v2 = vpop.f32.mrb[12].mxu1 }
 0x558   :  { %v4616_v3 = vadd.f32 %v1161_v59, %v5121_v61  ;;  %v1163_v4 = vpop.f32.mrb[9].mxu0  ;;  %v3998_v5 = vpop.f32.mrb[13].mxu1  ;;  %v1250_v15 = vadd.f32 %v1232_v2, %v5136_v12  ;;  %v1793_v59 = vld [vmem:[#allocation4 + $0x1a0] sm:$0xff] }
 0x559   :  { %v4617_v8 = vadd.f32 %v1163_v4, %v5130_v6 }
 0x55a   :  { %v3694_v7 = vmul.f32 -1.442695, %v4616_v3 }
 0x55b   :  { %v3695_v9 = vmul.f32 -1.442695, %v4617_v8 }
 0x55c   :  { %4719 = vpow2.f32 %v3694_v7 }
 0x55d   :  { %4721 = vpow2.f32 %v3695_v9 }
 0x566   :  { %v4720_v10 = vpop.eup %4719 }
 0x567   :  { %v1244_v13 = vadd.f32 1.0, %v4720_v10  ;;  %v4722_v14 = vpop.eup %4721 }
 0x568   :  { %v1245_v20 = vadd.f32 1.0, %v4722_v14 }
 0x569   :  { %4723 = vrcp.f32 %v1244_v13 }
 0x573   :  { %v4724_v17 = vpop.eup %4723 }
 0x574   :  { %v1251_v18 = vmul.f32 %v4724_v17, %v1250_v15 }
 0x576   :  { %v1252_v19 = vadd.f32 %v1251_v18, %v5109_v47 }
 0x578   :  { %4725 = vtanh.f32 %v1252_v19 }
 0x579   :  { %4727 = vrcp.f32 %v1245_v20  ;;  %v1789_v20 = vld [vmem:[#allocation4 + $0x180] sm:$0xff] }
 0x582   :  { %v4726_v23 = vpop.eup %4725 }
 0x583   :  { %v1254_v24 = vsub.f32 %v5205_v55, %v4726_v23  ;;  %v4728_v25 = vpop.eup %4727 }
 0x585   :  { %v1255_v26 = vmul.f32 %v4728_v25, %v1254_v24  ;;  %v1796_v25 = vld [vmem:[#allocation4 + $0x1b8] sm:$0xff] }
 0x587   :  { %v5227_v63 = vadd.f32 %v4726_v23, %v1255_v26  ;;  %v1792_v23 = vld [vmem:[#allocation4 + $0x198] sm:$0xff]  ;;  %v1799_v26 = vld [vmem:[#allocation4 + $0x1d0] sm:$0xff] }
 0x589   :  { %3696 = vmatmul.mubr.msk.f32.vlgmr.msra.gmra.mrb[10].mxu0 %vm400_vm1, %v5227_v63  ;;  %4008 = vmatmul.mubr.msk.f32.vlgmr.msra.gmra.mrb[14].mxu1 %vm400_vm1, %v5227_v63 }
 0x58a   :  { %4359 = vmatpush1.bf16.msra.mxu0 %v5075_v32  ;;  %4366 = vmatpush3.bf16.msra.mxu1 %v5033_v16 }
 0x58b   :  { %4361 = vmatprep.subr.bf16.mxu0 %v5078_v33  ;;  %4367 = vmatprep.subr.bf16.mxu1 %v4924_v21 }
 0x58c   :  { %1505 = vmatprep.mubr.f32.mxu0 %v4923_v0  ;;  %4018 = vmatprep.mubr.msk.f32.mxu1 %vm4925_vm0, %v4923_v0 }
 0x58e   :  { %4363 = vmatpush1.bf16.msra.mxu0 %v5083_v36  ;;  %4369 = vmatpush3.bf16.msra.mxu1 %v5046_v22 }
 0x58f   :  { %4378 = vmatprep.subr.bf16.mxu1 %v4924_v21  ;;  %4371 = vmatprep.subr.bf16.mxu0 %v5071_v27 }
 0x65c   :  { %v1334_v47 = vpop.f32.mrb[10].mxu0  ;;  %v1405_v30 = vpop.f32.mrb[14].mxu1 }
 0x65d   :  { %v4618_v31 = vadd.f32 %v1334_v47, %v5121_v61  ;;  %v1336_v34 = vpop.f32.mrb[11].mxu0  ;;  %v4009_v35 = vpop.f32.mrb[15].mxu1  ;;  %v1423_v48 = vadd.f32 %v1405_v30, %v5136_v12  ;;  %v4386_v30 = vpack.c.bf16 %v1792_v23, %v1789_v20  ;;  %v1791_v23 = vld [vmem:[#allocation4 + $0x190] sm:$0xff] }
 0x65e   :  { %v4619_v40 = vadd.f32 %v1336_v34, %v5130_v6  ;;  %v4388_v34 = vpack.c.bf16 %v1799_v26, %v1796_v25  ;;  %v1795_v35 = vld [vmem:[#allocation4 + $0x1b0] sm:$0xff]  ;;  %v1797_v26 = vld [vmem:[#allocation4 + $0x1c0] sm:$0xff] }
 0x65f   :  { %v3698_v37 = vmul.f32 -1.442695, %v4618_v31 }
 0x660   :  { %v3699_v42 = vmul.f32 -1.442695, %v4619_v40  ;;  %v1802_v40 = vld [vmem:[#allocation4 + $0x1e8] sm:$0xff] }
 0x661   :  { %4729 = vpow2.f32 %v3698_v37  ;;  %v1798_v37 = vld [vmem:[#allocation4 + $0x1c8] sm:$0xff] }
 0x662   :  { %4731 = vpow2.f32 %v3699_v42  ;;  %v4390_v42 = vpack.c.bf16 %v1798_v37, %v1795_v35  ;;  %v1806_v35 = vld [vmem:[#allocation4 + $0x208] sm:$0xff] }
 0x66b   :  { %v4730_v43 = vpop.eup %4729 }
 0x66c   :  { %v1417_v44 = vadd.f32 1.0, %v4730_v43  ;;  %v4732_v46 = vpop.eup %4731 }
 0x66d   :  { %v1418_v53 = vadd.f32 1.0, %v4732_v46  ;;  %v1804_v46 = vld [vmem:[#allocation4 + $0x1f8] sm:$0xff] }
 0x66e   :  { %4733 = vrcp.f32 %v1417_v44  ;;  %v1801_v44 = vld [vmem:[#allocation4 + $0x1e0] sm:$0xff] }
 0x678   :  { %v4734_v50 = vpop.eup %4733 }
 0x679   :  { %v1424_v27 = vmul.f32 %v4734_v50, %v1423_v48  ;;  %v1808_v48 = vld [vmem:[#allocation4 + $0x218] sm:$0xff]  ;;  %v1811_v50 = vld [vmem:[#allocation4 + $0x230] sm:$0xff] }
 0x67b   :  { %v1425_v52 = vadd.f32 %v1424_v27, %v5107_v45  ;;  %v1790_v45 = vld [vmem:[#allocation4 + $0x188] sm:$0xff]  ;;  %v4394_v27 = vpack.c.bf16 %v1804_v46, %v1801_v44 }
 0x67c   :  { %v1818_v44 = vld [vmem:[#allocation4 + $0x268] sm:$0xff] }
 0x67d   :  { %4735 = vtanh.f32 %v1425_v52  ;;  %v4396_v52 = vpack.c.bf16 %v1811_v50, %v1808_v48  ;;  %v1821_v48 = vld [vmem:[#allocation4 + $0x280] sm:$0xff]  ;;  %v1824_v50 = vld [vmem:[#allocation4 + $0x298] sm:$0xff] }
 0x67e   :  { %4737 = vrcp.f32 %v1418_v53  ;;  %v1807_v53 = vld [vmem:[#allocation4 + $0x210] sm:$0xff] }
 0x687   :  { %v4736_v54 = vpop.eup %4735 }
 0x688   :  { %v1427_v56 = vsub.f32 %v5227_v63, %v4736_v54  ;;  %v4738_v57 = vpop.eup %4737 }
 0x68a   :  { %v1428_v58 = vmul.f32 %v4738_v57, %v1427_v56  ;;  %v1814_v56 = vld [vmem:[#allocation4 + $0x248] sm:$0xff]  ;;  %v1817_v57 = vld [vmem:[#allocation4 + $0x260] sm:$0xff] }
 0x68c   :  { %v5249_v60 = vadd.f32 %v4736_v54, %v1428_v58  ;;  %v1810_v54 = vld [vmem:[#allocation4 + $0x228] sm:$0xff] }
 0x68d   :  { %v4398_v58 = vpack.c.bf16 %v1810_v54, %v1807_v53  ;;  %v1830_v53 = vld [vmem:[#allocation4 + $0x2c8] sm:$0xff] }
 0x68e   :  { %3700 = vmatmul.mubr.msk.f32.vlgmr.msra.gmra.mrb[12].mxu0 %vm400_vm1, %v5249_v60  ;;  %4019 = vmatmul.mubr.msk.f32.vlgmr.msra.gmra.mrb[16].mxu1 %vm400_vm1, %v5249_v60 }
 0x68f   :  { %4380 = vmatpush3.bf16.msra.mxu1 %v5033_v16  ;;  %4373 = vmatpush1.bf16.msra.mxu0 %v5075_v32  ;;  %v4384_v16 = vpack.c.bf16 %v1793_v59, %v1790_v45  ;;  %v4400_v45 = vpack.c.bf16 %v1817_v57, %v1814_v56  ;;  %v1813_v59 = vld [vmem:[#allocation4 + $0x240] sm:$0xff]  ;;  %v1836_v57 = vld [vmem:[#allocation4 + $0x2f8] sm:$0xff] }
 0x690   :  { %4381 = vmatprep.subr.bf16.mxu1 %v4924_v21  ;;  %4375 = vmatprep.subr.bf16.mxu0 %v5078_v33  ;;  %v1833_v56 = vld [vmem:[#allocation4 + $0x2e0] sm:$0xff] }
 0x691   :  { %1678 = vmatprep.mubr.f32.mxu0 %v4923_v0  ;;  %4029 = vmatprep.mubr.msk.f32.mxu1 %vm4925_vm0, %v4923_v0 }
 0x693   :  { %4383 = vmatpush3.bf16.msra.mxu1 %v5046_v22  ;;  %4377 = vmatpush1.bf16.msra.mxu0 %v5083_v36 }
 0x694   :  { %4456 = vmatprep.subr.bf16.mxu0 %v4924_v21  ;;  %4385 = vmatprep.subr.bf16.mxu1 %v4384_v16  ;;  %v1816_v16 = vld [vmem:[#allocation4 + $0x258] sm:$0xff] }
 0x761   :  { %v1507_v32 = vpop.f32.mrb[12].mxu0  ;;  %v1578_v2 = vpop.f32.mrb[16].mxu1 }
 0x762   :  { %v4620_v3 = vadd.f32 %v1507_v32, %v5121_v61  ;;  %v1509_v33 = vpop.f32.mrb[13].mxu0  ;;  %v4020_v4 = vpop.f32.mrb[17].mxu1  ;;  %v1596_v10 = vadd.f32 %v1578_v2, %v5136_v12  ;;  %v1820_v32 = vld [vmem:[#allocation4 + $0x278] sm:$0xff]  ;;  %v1823_v2 = vld [vmem:[#allocation4 + $0x290] sm:$0xff] }
 0x763   :  { %v4621_v7 = vadd.f32 %v1509_v33, %v5130_v6  ;;  %v4404_v33 = vpack.c.bf16 %v1823_v2, %v1820_v32  ;;  %v1819_v4 = vld [vmem:[#allocation4 + $0x270] sm:$0xff]  ;;  %v2113_v2 = vld [vmem:[#allocation6 + $0x88] sm:$0xff] }
 0x764   :  { %v3702_v5 = vmul.f32 -1.442695, %v4620_v3  ;;  %v4402_v3 = vpack.c.bf16 %v1816_v16, %v1813_v59  ;;  %v2112_v59 = vld [vmem:[#allocation6 + $0x80] sm:$0xff]  ;;  %v2110_v32 = vld [vmem:[#allocation6 + $0x70] sm:$0xff] }
 0x765   :  { %v3703_v8 = vmul.f32 -1.442695, %v4621_v7  ;;  %v1826_v7 = vld [vmem:[#allocation4 + $0x2a8] sm:$0xff] }
 0x766   :  { %4739 = vpow2.f32 %v3702_v5  ;;  %v1822_v5 = vld [vmem:[#allocation4 + $0x288] sm:$0xff] }
 0x767   :  { %4741 = vpow2.f32 %v3703_v8  ;;  %v1829_v8 = vld [vmem:[#allocation4 + $0x2c0] sm:$0xff] }
 0x770   :  { %v4740_v22 = vpop.eup %4739 }
 0x771   :  { %v1590_v9 = vadd.f32 1.0, %v4740_v22  ;;  %v4742_v36 = vpop.eup %4741  ;;  %v4406_v22 = vpack.c.bf16 %v1822_v5, %v1819_v4  ;;  %v2119_v4 = vld [vmem:[#allocation6 + $0xb8] sm:$0xff] }
 0x772   :  { %v1591_v17 = vadd.f32 1.0, %v4742_v36  ;;  %v1825_v36 = vld [vmem:[#allocation4 + $0x2a0] sm:$0xff] }
 0x773   :  { %4743 = vrcp.f32 %v1590_v9  ;;  %v4408_v9 = vpack.c.bf16 %v1829_v8, %v1826_v7 }
 0x77d   :  { %v4744_v13 = vpop.eup %4743 }
 0x77e   :  { %v1597_v14 = vmul.f32 %v4744_v13, %v1596_v10  ;;  %v1828_v10 = vld [vmem:[#allocation4 + $0x2b8] sm:$0xff] }
 0x77f   :  { %v1832_v13 = vld [vmem:[#allocation4 + $0x2d8] sm:$0xff] }
 0x780   :  { %v1598_v15 = vadd.f32 %v1597_v14, %v5113_v51  ;;  %v1805_v51 = vld [vmem:[#allocation4 + $0x200] sm:$0xff]  ;;  %v1835_v14 = vld [vmem:[#allocation4 + $0x2f0] sm:$0xff] }
 0x781   :  { %v4392_v43 = vpack.c.bf16 %v1805_v51, %v1802_v40  ;;  %v1809_v40 = vld [vmem:[#allocation4 + $0x220] sm:$0xff]  ;;  %v1812_v51 = vld [vmem:[#allocation4 + $0x238] sm:$0xff] }
 0x782   :  { %4745 = vtanh.f32 %v1598_v15  ;;  %v4410_v15 = vpack.c.bf16 %v1828_v10, %v1825_v36 }
 0x783   :  { %4747 = vrcp.f32 %v1591_v17  ;;  %v4412_v17 = vpack.c.bf16 %v1835_v14, %v1832_v13 }
 0x78c   :  { %v4746_v18 = vpop.eup %4745 }
 0x78d   :  { %v1600_v19 = vsub.f32 %v5249_v60, %v4746_v18  ;;  %v4748_v24 = vpop.eup %4747 }
 0x78f   :  { %v1601_v47 = vmul.f32 %v4748_v24, %v1600_v19  ;;  %v1834_v19 = vld [vmem:[#allocation4 + $0x2e8] sm:$0xff] }
 0x790   :  { %v1794_v24 = vld [vmem:[#allocation4 + $0x1a8] sm:$0xff] }
 0x791   :  { %v5270_v31 = vadd.f32 %v4746_v18, %v1601_v47  ;;  %v1831_v18 = vld [vmem:[#allocation4 + $0x2d0] sm:$0xff]  ;;  %v4416_v25 = vpack.c.bf16 %v1794_v24, %v1791_v23  ;;  %v1800_v47 = vld [vmem:[#allocation4 + $0x1d8] sm:$0xff] }
 0x792   :  { %v4414_v20 = vpack.c.bf16 %v1834_v19, %v1831_v18 }
 0x793   :  { %3704 = vmatmul.mubr.msk.f32.vlgmr.msra.gmra.mrb[14].mxu0 %vm400_vm1, %v5270_v31  ;;  %4030 = vmatmul.mubr.msk.f32.vlgmr.msra.gmra.mrb[18].mxu1 %vm400_vm1, %v5270_v31 }
 0x794   :  { %4387 = vmatpush1.bf16.msra.mxu1 %v4386_v30  ;;  %1929 = vmatprep.mubr.f32.mxu1 %v4923_v0  ;;  %v4420_v30 = vpack.c.bf16 %v1800_v47, %v1797_v26 }
 0x795   :  { %4389 = vmatprep.subr.bf16.mxu1 %v4388_v34  ;;  %4084 = vmatprep.mubr.msk.f32.mxu0 %vm4925_vm0, %v4923_v0  ;;  %v1803_v34 = vld [vmem:[#allocation4 + $0x1f0] sm:$0xff] }
 0x796   :  { %v4424_v37 = vpack.c.bf16 %v1806_v35, %v1803_v34  ;;  %v2108_v34 = vld [vmem:[#allocation6 + $0x60] sm:$0xff]  ;;  %v2111_v35 = vld [vmem:[#allocation6 + $0x78] sm:$0xff] }
 0x798   :  { %4391 = vmatpush1.bf16.msra.mxu1 %v4390_v42  ;;  %v4428_v42 = vpack.c.bf16 %v1812_v51, %v1809_v40  ;;  %v2118_v40 = vld [vmem:[#allocation6 + $0xb0] sm:$0xff] }
 0x799   :  { %4393 = vmatprep.subr.bf16.mxu1 %v4392_v43  ;;  %v1815_v43 = vld [vmem:[#allocation4 + $0x250] sm:$0xff] }
 0x79a   :  { %v4432_v46 = vpack.c.bf16 %v1818_v44, %v1815_v43 }
 0x79c   :  { %4395 = vmatpush1.bf16.msra.mxu1 %v4394_v27  ;;  %v4436_v27 = vpack.c.bf16 %v1824_v50, %v1821_v48 }
 0x79d   :  { %4397 = vmatprep.subr.bf16.mxu1 %v4396_v52  ;;  %v1827_v52 = vld [vmem:[#allocation4 + $0x2b0] sm:$0xff] }
 0x79e   :  { %v4440_v54 = vpack.c.bf16 %v1830_v53, %v1827_v52 }
 0x7a0   :  { %4399 = vmatpush1.bf16.msra.mxu1 %v4398_v58  ;;  %v4444_v58 = vpack.c.bf16 %v1836_v57, %v1833_v56 }
 0x7a1   :  { %4401 = vmatprep.subr.bf16.mxu1 %v4400_v45  ;;  %v2109_v45 = vld [vmem:[#allocation6 + $0x68] sm:$0xff] }
 0x7a2   :  { %v5293_v16 = vpack.c.bf16 %v2112_v59, %v2109_v45 }
 0x7a4   :  { %4403 = vmatpush1.bf16.msra.mxu1 %v4402_v3  ;;  %v2116_v3 = vld [vmem:[#allocation6 + $0xa0] sm:$0xff] }
 0x7a5   :  { %4405 = vmatprep.subr.bf16.mxu1 %v4404_v33  ;;  %v5296_v33 = vpack.c.bf16 %v2113_v2, %v2110_v32  ;;  %v5299_v5 = vpack.c.bf16 %v2119_v4, %v2116_v3 }
 0x7a7   :  { %4458 = vmatpush3.bf16.msra.mxu0 %v5296_v33 }
 0x7a8   :  { %4407 = vmatpush1.bf16.msra.mxu1 %v4406_v22  ;;  %4459 = vmatprep.subr.bf16.mxu0 %v4924_v21 }
 0x7a9   :  { %4409 = vmatprep.subr.bf16.mxu1 %v4408_v9 }
 0x7ab   :  { %4461 = vmatpush3.bf16.msra.mxu0 %v5299_v5 }
 0x7ac   :  { %4411 = vmatpush1.bf16.msra.mxu1 %v4410_v15  ;;  %4470 = vmatprep.subr.bf16.mxu0 %v4924_v21 }
 0x7ad   :  { %4413 = vmatprep.subr.bf16.mxu1 %v4412_v17 }
 0x7ae   :  { %4085 = vmatmul.mubr.f32.vlgmr.msra.gmra.mrb[20].mxu0 %v4923_v0 }
 0x7af   :  { %4472 = vmatpush3.bf16.msra.mxu0 %v5296_v33  ;;  %4095 = vmatprep.mubr.msk.f32.mxu0 %vm4925_vm0, %v4923_v0 }
 0x7b0   :  { %4415 = vmatpush1.bf16.msra.mxu1 %v4414_v20  ;;  %4473 = vmatprep.subr.bf16.mxu0 %v4924_v21 }
 0x7b1   :  { %4417 = vmatprep.subr.bf16.mxu1 %v4416_v25 }
 0x7b3   :  { %1930 = vmatmul.mubr.f32.vlgmr.msra.gmra.mrb[20].mxu1 %v5139_v28  ;;  %4475 = vmatpush3.bf16.msra.mxu0 %v5299_v5 }
 0x7b4   :  { %1935 = vmatprep.mubr.f32.mxu1 %v4923_v0  ;;  %4419 = vmatpush3.bf16.msra.mxu1 %v4416_v25 }
 0x7b5   :  { %4421 = vmatprep.subr.bf16.mxu1 %v4420_v30  ;;  %4484 = vmatprep.subr.bf16.mxu0 %v4924_v21 }
 0x7b7   :  { %1936 = vmatmul.mubr.f32.gmra.mrb[22].mxu1 %v5161_v1 }
 0x7b8   :  { %1941 = vmatprep.mubr.f32.mxu1 %v4923_v0  ;;  %4423 = vmatpush3.bf16.msra.mxu1 %v4420_v30 }
 0x7b9   :  { %4425 = vmatprep.subr.bf16.mxu1 %v4424_v37 }
 0x7bb   :  { %1942 = vmatmul.mubr.f32.gmra.mrb[24].mxu1 %v5183_v29 }
 0x7bc   :  { %1947 = vmatprep.mubr.f32.mxu1 %v4923_v0  ;;  %4427 = vmatpush3.bf16.msra.mxu1 %v4424_v37  ;;  %v2115_v37 = vld [vmem:[#allocation6 + $0x98] sm:$0xff] }
 0x7bd   :  { %4429 = vmatprep.subr.bf16.mxu1 %v4428_v42  ;;  %v5319_v51 = vpack.c.bf16 %v2118_v40, %v2115_v37 }
 0x7bf   :  { %1948 = vmatmul.mubr.f32.gmra.mrb[26].mxu1 %v5205_v55 }
 0x7c0   :  { %1953 = vmatprep.mubr.f32.mxu1 %v4923_v0  ;;  %4431 = vmatpush3.bf16.msra.mxu1 %v4428_v42  ;;  %v2117_v42 = vld [vmem:[#allocation6 + $0xa8] sm:$0xff] }
 0x7c1   :  { %4433 = vmatprep.subr.bf16.mxu1 %v4432_v46 }
 0x7c3   :  { %1954 = vmatmul.mubr.f32.gmra.mrb[28].mxu1 %v5227_v63 }
 0x7c4   :  { %1959 = vmatprep.mubr.f32.mxu1 %v4923_v0  ;;  %4435 = vmatpush3.bf16.msra.mxu1 %v4432_v46 }
 0x7c5   :  { %4437 = vmatprep.subr.bf16.mxu1 %v4436_v27 }
 0x7c7   :  { %1960 = vmatmul.mubr.f32.gmra.mrb[30].mxu1 %v5249_v60 }
 0x7c8   :  { %1965 = vmatprep.mubr.f32.mxu1 %v4923_v0  ;;  %4439 = vmatpush3.bf16.msra.mxu1 %v4436_v27 }
 0x7c9   :  { %4441 = vmatprep.subr.bf16.mxu1 %v4440_v54 }
 0x7cb   :  { %1966 = vmatmul.mubr.f32.gmra.mrb[32].mxu1 %v5270_v31 }
 0x7cc   :  { %1971 = vmatprep.mubr.f32.mxu1 %v4923_v0  ;;  %4443 = vmatpush3.bf16.msra.mxu1 %v4440_v54 }
 0x7cd   :  { %4445 = vmatprep.subr.bf16.mxu1 %v4444_v58 }
 0x7d0   :  { %4447 = vmatpush3.bf16.msra.mxu1 %v4444_v58 }
 0x7d1   :  { %4449 = vmatprep.subr.bf16.mxu1 %v5293_v16 }
 0x866   :  { %v1680_v7 = vpop.f32.mrb[14].mxu0  ;;  %v1751_v8 = vpop.f32.mrb[18].mxu1 }
 0x867   :  { %v4622_v22 = vadd.f32 %v1680_v7, %v5121_v61  ;;  %v1682_v9 = vpop.f32.mrb[15].mxu0  ;;  %v4031_v36 = vpop.f32.mrb[19].mxu1  ;;  %v1769_v19 = vadd.f32 %v1751_v8, %v5136_v12  ;;  %v5317_v12 = vpack.c.bf16 %v2111_v35, %v2108_v34 }
 0x868   :  { %v4623_v13 = vadd.f32 %v1682_v9, %v5130_v6 }
 0x869   :  { %v3706_v10 = vmul.f32 -1.442695, %v4622_v22 }
 0x86a   :  { %v3707_v14 = vmul.f32 -1.442695, %v4623_v13 }
 0x86b   :  { %4749 = vpow2.f32 %v3706_v10 }
 0x86c   :  { %4751 = vpow2.f32 %v3707_v14 }
 0x875   :  { %v4750_v15 = vpop.eup %4749 }
 0x876   :  { %v1763_v17 = vadd.f32 1.0, %v4750_v15  ;;  %v4752_v18 = vpop.eup %4751 }
 0x877   :  { %v1764_v25 = vadd.f32 1.0, %v4752_v18 }
 0x878   :  { %4753 = vrcp.f32 %v1763_v17 }
 0x882   :  { %v4754_v20 = vpop.eup %4753 }
 0x883   :  { %v1770_v23 = vmul.f32 %v4754_v20, %v1769_v19 }
 0x885   :  { %v1771_v24 = vadd.f32 %v1770_v23, %v5111_v49  ;;  %v2114_v49 = vld [vmem:[#allocation6 + $0x90] sm:$0xff] }
 0x886   :  { %v5324_v43 = vpack.c.bf16 %v2117_v42, %v2114_v49 }
 0x887   :  { %4755 = vtanh.f32 %v1771_v24 }
 0x888   :  { %4757 = vrcp.f32 %v1764_v25 }
 0x891   :  { %v4756_v61 = vpop.eup %4755 }
 0x892   :  { %v1773_v26 = vsub.f32 %v5270_v31, %v4756_v61  ;;  %v4758_v47 = vpop.eup %4757 }
 0x894   :  { %v1774_v6 = vmul.f32 %v4758_v47, %v1773_v26 }
 0x896   :  { %v1775_v30 = vadd.f32 %v4756_v61, %v1774_v6 }
 0x898   :  { %1972 = vmatmul.mubr.f32.gmra.mrb[34].mxu1 %v1775_v30 }
 0x899   :  { %4064 = vmatprep.mubr.f32.mxu1 %v5139_v28  ;;  %v2264_v28 = vpop.f32.mrb[20].mxu0 }
 0x89c   :  { %4065 = vmatmul.mubr.f32.vlgmr.msra.gmra.mrb[36].mxu1 %v5161_v1  ;;  %v4086_v1 = vpop.f32.mrb[21].mxu0 }
 0x89d   :  { %4067 = vmatprep.mubr.f32.mxu1 %v5183_v29  ;;  %4451 = vmatpush1.bf16.msra.mxu1 %v5317_v12  ;;  %v3708_v29 = vld [vmem:[%s5612_s3 + $0x6] sm:$0x3f] }
 0x89e   :  { %4453 = vmatprep.subr.bf16.mxu1 %v5319_v51  ;;  %v1841_v56 = vrot.slane %v3708_v29, %v5102_v41  ;;  %v1845_v4 = vrot.slane %v3708_v29, %v115_v62  ;;  %v5373_v14 = vrot.slane %v3708_v29, %v392_v11 }
 0x8a0   :  { %4068 = vmatmul.mubr.f32.gmra.mrb[38].mxu1 %v5205_v55  ;;  %v1849_v55 = vrot.slane %v3708_v29, %v119_v39  ;;  %v5360_v59 = vrot.slane %v1841_v56, %v5102_v41  ;;  %v5368_v22 = vrot.slane %v1845_v4, %v5102_v41  ;;  %v2282_v15 = vadd.f32 %v2264_v28, %v5373_v14 }
 0x8a1   :  { %4070 = vmatprep.mubr.f32.mxu1 %v5227_v63  ;;  %4455 = vmatpush1.bf16.msra.mxu1 %v5324_v43 }
 0x8a2   :  { %4463 = vmatprep.subr.bf16.mxu1 %v5293_v16  ;;  %v1864_v63 = vrot.slane %v1849_v55, %v5102_v41 }
 0x8a4   :  { %4071 = vmatmul.mubr.f32.gmra.mrb[40].mxu1 %v5249_v60 }
 0x8a5   :  { %4073 = vmatprep.mubr.f32.mxu1 %v5270_v31 }
 0x8a8   :  { %4074 = vmatmul.mubr.f32.gmra.mrb[42].mxu1 %v1775_v30 }
 0x8a9   :  { %2191 = vmatprep.mubr.f32.mxu1 %v4923_v0 }
 0x8ac   :  { %2192 = vmatmul.mubr.f32.vlgmr.msra.gmra.mrb[20].mxu1 %v4923_v0 }
 0x8ad   :  { %4465 = vmatpush1.bf16.msra.mxu1 %v5317_v12  ;;  %2360 = vmatprep.mubr.f32.mxu1 %v4923_v0 }
 0x8ae   :  { %4467 = vmatprep.subr.bf16.mxu1 %v5319_v51 }
 0x8b1   :  { %4469 = vmatpush1.bf16.msra.mxu1 %v5324_v43 }
 0x8b2   :  { %4477 = vmatprep.subr.bf16.mxu1 %v5293_v16 }
 0x96f   :  { %v4066_v60 = vpop.f32.mrb[36].mxu1 }
 0x970   :  { %v5346_v31 = vadd.f32 %v4066_v60, %v1864_v63  ;;  %v2044_v44 = vpop.f32.mrb[37].mxu1 }
 0x971   :  { %v2045_v18 = vadd.f32 %v2044_v44, %v1864_v63 }
 0x973   :  { %v4069_v46 = vpop.f32.mrb[38].mxu1 }
 0x974   :  { %v5348_v48 = vadd.f32 %v4069_v46, %v1864_v63  ;;  %v2054_v50 = vpop.f32.mrb[39].mxu1 }
 0x975   :  { %v5350_v27 = vadd.f32 %v2054_v50, %v1864_v63 }
 0x977   :  { %v4072_v52 = vpop.f32.mrb[40].mxu1 }
 0x978   :  { %v5352_v53 = vadd.f32 %v4072_v52, %v1864_v63  ;;  %v2064_v54 = vpop.f32.mrb[41].mxu1 }
 0x979   :  { %v5355_v57 = vadd.f32 %v2064_v54, %v1864_v63 }
 0x97b   :  { %v4075_v39 = vpop.f32.mrb[42].mxu1 }
 0x97c   :  { %v5357_v58 = vadd.f32 %v4075_v39, %v1864_v63  ;;  %v2074_v45 = vpop.f32.mrb[43].mxu1 }
 0x97d   :  { %v5362_v32 = vadd.f32 %v2074_v45, %v1864_v63 }
 0x97f   :  { %v2193_v2 = vpop.f32.mrb[20].mxu1 }
 0x980   :  { %v4624_v3 = vadd.f32 %v2193_v2, %v5360_v59  ;;  %v2195_v7 = vpop.f32.mrb[21].mxu1 }
 0x981   :  { %v4625_v9 = vadd.f32 %v2195_v7, %v5368_v22 }
 0x982   :  { %v3709_v8 = vmul.f32 -1.442695, %v4624_v3 }
 0x983   :  { %v3710_v36 = vmul.f32 -1.442695, %v4625_v9 }
 0x984   :  { %4759 = vpow2.f32 %v3709_v8 }
 0x985   :  { %4761 = vpow2.f32 %v3710_v36 }
 0x98e   :  { %v4760_v10 = vpop.eup %4759 }
 0x98f   :  { %v2276_v13 = vadd.f32 1.0, %v4760_v10  ;;  %v4762_v62 = vpop.eup %4761 }
 0x990   :  { %v2277_v20 = vadd.f32 1.0, %v4762_v62 }
 0x991   :  { %4763 = vrcp.f32 %v2276_v13 }
 0x99b   :  { %v4764_v17 = vpop.eup %4763 }
 0x99c   :  { %v2283_v19 = vmul.f32 %v4764_v17, %v2282_v15 }
 0x99e   :  { %v2284_v41 = vadd.f32 %v2283_v19, %v2045_v18 }
 0x9a0   :  { %4765 = vtanh.f32 %v2284_v41 }
 0x9a1   :  { %4767 = vrcp.f32 %v2277_v20 }
 0x9aa   :  { %v4766_v23 = vpop.eup %4765 }
 0x9ab   :  { %v2286_v24 = vsub.f32 0.0, %v4766_v23  ;;  %v4768_v25 = vpop.eup %4767 }
 0x9ad   :  { %v2287_v61 = vmul.f32 %v4768_v25, %v2286_v24 }
 0x9af   :  { %v5376_v26 = vadd.f32 %v4766_v23, %v2287_v61 }
 0x9b1   :  { %3711 = vmatmul.mubr.msk.f32.vlgmr.msra.gmra.mrb[22].mxu1 %vm400_vm1, %v5376_v26  ;;  %4096 = vmatmul.mubr.msk.f32.vlgmr.msra.gmra.mrb[22].mxu0 %vm400_vm1, %v5376_v26 }
 0x9b2   :  { %4479 = vmatpush1.bf16.msra.mxu1 %v5317_v12  ;;  %4486 = vmatpush3.bf16.msra.mxu0 %v5296_v33 }
 0x9b3   :  { %4481 = vmatprep.subr.bf16.mxu1 %v5319_v51  ;;  %4487 = vmatprep.subr.bf16.mxu0 %v4924_v21 }
 0x9b4   :  { %2529 = vmatprep.mubr.f32.mxu1 %v4923_v0  ;;  %4106 = vmatprep.mubr.msk.f32.mxu0 %vm4925_vm0, %v4923_v0 }
 0x9b6   :  { %4483 = vmatpush1.bf16.msra.mxu1 %v5324_v43  ;;  %4489 = vmatpush3.bf16.msra.mxu0 %v5299_v5 }
 0x9b7   :  { %4491 = vmatprep.subr.bf16.mxu1 %v5293_v16  ;;  %4498 = vmatprep.subr.bf16.mxu0 %v4924_v21 }
 0xa84   :  { %v2362_v38 = vpop.f32.mrb[22].mxu1  ;;  %v2433_v11 = vpop.f32.mrb[22].mxu0 }
 0xa85   :  { %v4626_v47 = vadd.f32 %v2362_v38, %v5360_v59  ;;  %v2364_v6 = vpop.f32.mrb[23].mxu1  ;;  %v4097_v30 = vpop.f32.mrb[23].mxu0  ;;  %v2451_v28 = vadd.f32 %v2433_v11, %v5373_v14 }
 0xa86   :  { %v4627_v35 = vadd.f32 %v2364_v6, %v5368_v22 }
 0xa87   :  { %v3713_v34 = vmul.f32 -1.442695, %v4626_v47 }
 0xa88   :  { %v3714_v37 = vmul.f32 -1.442695, %v4627_v35 }
 0xa89   :  { %4769 = vpow2.f32 %v3713_v34 }
 0xa8a   :  { %4771 = vpow2.f32 %v3714_v37 }
 0xa93   :  { %v4770_v40 = vpop.eup %4769 }
 0xa94   :  { %v2445_v49 = vadd.f32 1.0, %v4770_v40  ;;  %v4772_v42 = vpop.eup %4771 }
 0xa95   :  { %v2446_v63 = vadd.f32 1.0, %v4772_v42 }
 0xa96   :  { %4773 = vrcp.f32 %v2445_v49 }
 0xaa0   :  { %v4774_v1 = vpop.eup %4773 }
 0xaa1   :  { %v2452_v29 = vmul.f32 %v4774_v1, %v2451_v28 }
 0xaa3   :  { %v2453_v55 = vadd.f32 %v2452_v29, %v5346_v31 }
 0xaa5   :  { %4775 = vtanh.f32 %v2453_v55 }
 0xaa6   :  { %4777 = vrcp.f32 %v2446_v63 }
 0xaaf   :  { %v4776_v60 = vpop.eup %4775 }
 0xab0   :  { %v2455_v44 = vsub.f32 %v5376_v26, %v4776_v60  ;;  %v4778_v46 = vpop.eup %4777 }
 0xab2   :  { %v2456_v50 = vmul.f32 %v4778_v46, %v2455_v44 }
 0xab4   :  { %v5398_v52 = vadd.f32 %v4776_v60, %v2456_v50 }
 0xab6   :  { %3715 = vmatmul.mubr.msk.f32.vlgmr.msra.gmra.mrb[24].mxu1 %vm400_vm1, %v5398_v52  ;;  %4107 = vmatmul.mubr.msk.f32.vlgmr.msra.gmra.mrb[24].mxu0 %vm400_vm1, %v5398_v52 }
 0xab7   :  { %4493 = vmatpush1.bf16.msra.mxu1 %v5317_v12  ;;  %4500 = vmatpush3.bf16.msra.mxu0 %v5296_v33 }
 0xab8   :  { %4495 = vmatprep.subr.bf16.mxu1 %v5319_v51  ;;  %4501 = vmatprep.subr.bf16.mxu0 %v4924_v21 }
 0xab9   :  { %2698 = vmatprep.mubr.f32.mxu1 %v4923_v0  ;;  %4117 = vmatprep.mubr.msk.f32.mxu0 %vm4925_vm0, %v4923_v0 }
 0xabb   :  { %4497 = vmatpush1.bf16.msra.mxu1 %v5324_v43  ;;  %4503 = vmatpush3.bf16.msra.mxu0 %v5299_v5 }
 0xabc   :  { %4505 = vmatprep.subr.bf16.mxu1 %v5293_v16  ;;  %4512 = vmatprep.subr.bf16.mxu0 %v4924_v21 }
 0xb89   :  { %v2531_v31 = vpop.f32.mrb[24].mxu1  ;;  %v2602_v54 = vpop.f32.mrb[24].mxu0 }
 0xb8a   :  { %v4628_v56 = vadd.f32 %v2531_v31, %v5360_v59  ;;  %v2533_v39 = vpop.f32.mrb[25].mxu1  ;;  %v4108_v45 = vpop.f32.mrb[25].mxu0  ;;  %v2620_v36 = vadd.f32 %v2602_v54, %v5373_v14 }
 0xb8b   :  { %v4629_v3 = vadd.f32 %v2533_v39, %v5368_v22 }
 0xb8c   :  { %v3717_v2 = vmul.f32 -1.442695, %v4628_v56 }
 0xb8d   :  { %v3718_v4 = vmul.f32 -1.442695, %v4629_v3 }
 0xb8e   :  { %4779 = vpow2.f32 %v3717_v2 }
 0xb8f   :  { %4781 = vpow2.f32 %v3718_v4 }
 0xb98   :  { %v4780_v7 = vpop.eup %4779 }
 0xb99   :  { %v2614_v8 = vadd.f32 1.0, %v4780_v7  ;;  %v4782_v9 = vpop.eup %4781 }
 0xb9a   :  { %v2615_v62 = vadd.f32 1.0, %v4782_v9 }
 0xb9b   :  { %4783 = vrcp.f32 %v2614_v8 }
 0xba5   :  { %v4784_v10 = vpop.eup %4783 }
 0xba6   :  { %v2621_v13 = vmul.f32 %v4784_v10, %v2620_v36 }
 0xba8   :  { %v2622_v15 = vadd.f32 %v2621_v13, %v5350_v27 }
 0xbaa   :  { %4785 = vtanh.f32 %v2622_v15 }
 0xbab   :  { %4787 = vrcp.f32 %v2615_v62 }
 0xbb4   :  { %v4786_v17 = vpop.eup %4785 }
 0xbb5   :  { %v2624_v18 = vsub.f32 %v5398_v52, %v4786_v17  ;;  %v4788_v19 = vpop.eup %4787 }
 0xbb7   :  { %v2625_v20 = vmul.f32 %v4788_v19, %v2624_v18 }
 0xbb9   :  { %v5420_v41 = vadd.f32 %v4786_v17, %v2625_v20 }
 0xbbb   :  { %3719 = vmatmul.mubr.msk.f32.vlgmr.msra.gmra.mrb[26].mxu1 %vm400_vm1, %v5420_v41  ;;  %4118 = vmatmul.mubr.msk.f32.vlgmr.msra.gmra.mrb[26].mxu0 %vm400_vm1, %v5420_v41 }
 0xbbc   :  { %4507 = vmatpush1.bf16.msra.mxu1 %v5317_v12  ;;  %4514 = vmatpush3.bf16.msra.mxu0 %v5296_v33 }
 0xbbd   :  { %4509 = vmatprep.subr.bf16.mxu1 %v5319_v51  ;;  %4515 = vmatprep.subr.bf16.mxu0 %v4924_v21 }
 0xbbe   :  { %2867 = vmatprep.mubr.f32.mxu1 %v4923_v0  ;;  %4128 = vmatprep.mubr.msk.f32.mxu0 %vm4925_vm0, %v4923_v0 }
 0xbc0   :  { %4511 = vmatpush1.bf16.msra.mxu1 %v5324_v43  ;;  %4517 = vmatpush3.bf16.msra.mxu0 %v5299_v5 }
 0xbc1   :  { %4519 = vmatprep.subr.bf16.mxu1 %v5293_v16  ;;  %4526 = vmatprep.subr.bf16.mxu0 %v4924_v21 }
 0xc8e   :  { %v2700_v27 = vpop.f32.mrb[26].mxu1  ;;  %v2771_v23 = vpop.f32.mrb[26].mxu0 }
 0xc8f   :  { %v4630_v24 = vadd.f32 %v2700_v27, %v5360_v59  ;;  %v2702_v25 = vpop.f32.mrb[27].mxu1  ;;  %v4119_v61 = vpop.f32.mrb[27].mxu0  ;;  %v2789_v35 = vadd.f32 %v2771_v23, %v5373_v14 }
 0xc90   :  { %v4631_v11 = vadd.f32 %v2702_v25, %v5368_v22 }
 0xc91   :  { %v3721_v38 = vmul.f32 -1.442695, %v4630_v24 }
 0xc92   :  { %v3722_v47 = vmul.f32 -1.442695, %v4631_v11 }
 0xc93   :  { %4789 = vpow2.f32 %v3721_v38 }
 0xc94   :  { %4791 = vpow2.f32 %v3722_v47 }
 0xc9d   :  { %v4790_v6 = vpop.eup %4789 }
 0xc9e   :  { %v2783_v30 = vadd.f32 1.0, %v4790_v6  ;;  %v4792_v34 = vpop.eup %4791 }
 0xc9f   :  { %v2784_v42 = vadd.f32 1.0, %v4792_v34 }
 0xca0   :  { %4793 = vrcp.f32 %v2783_v30 }
 0xcaa   :  { %v4794_v37 = vpop.eup %4793 }
 0xcab   :  { %v2790_v40 = vmul.f32 %v4794_v37, %v2789_v35 }
 0xcad   :  { %v2791_v49 = vadd.f32 %v2790_v40, %v5348_v48 }
 0xcaf   :  { %4795 = vtanh.f32 %v2791_v49 }
 0xcb0   :  { %4797 = vrcp.f32 %v2784_v42 }
 0xcb9   :  { %v4796_v28 = vpop.eup %4795 }
 0xcba   :  { %v2793_v1 = vsub.f32 %v5420_v41, %v4796_v28  ;;  %v4798_v29 = vpop.eup %4797 }
 0xcbc   :  { %v2794_v55 = vmul.f32 %v4798_v29, %v2793_v1 }
 0xcbe   :  { %v5442_v63 = vadd.f32 %v4796_v28, %v2794_v55 }
 0xcc0   :  { %3723 = vmatmul.mubr.msk.f32.vlgmr.msra.gmra.mrb[28].mxu1 %vm400_vm1, %v5442_v63  ;;  %4129 = vmatmul.mubr.msk.f32.vlgmr.msra.gmra.mrb[28].mxu0 %vm400_vm1, %v5442_v63 }
 0xcc1   :  { %4521 = vmatpush1.bf16.msra.mxu1 %v5317_v12  ;;  %4528 = vmatpush3.bf16.msra.mxu0 %v5296_v33 }
 0xcc2   :  { %4523 = vmatprep.subr.bf16.mxu1 %v5319_v51  ;;  %4529 = vmatprep.subr.bf16.mxu0 %v4924_v21 }
 0xcc3   :  { %3036 = vmatprep.mubr.f32.mxu1 %v4923_v0  ;;  %4139 = vmatprep.mubr.msk.f32.mxu0 %vm4925_vm0, %v4923_v0 }
 0xcc5   :  { %4525 = vmatpush1.bf16.msra.mxu1 %v5324_v43  ;;  %4531 = vmatpush3.bf16.msra.mxu0 %v5299_v5 }
 0xcc6   :  { %4533 = vmatprep.subr.bf16.mxu1 %v5293_v16  ;;  %4540 = vmatprep.subr.bf16.mxu0 %v4924_v21 }
 0xd93   :  { %v2869_v48 = vpop.f32.mrb[28].mxu1  ;;  %v2940_v60 = vpop.f32.mrb[28].mxu0 }
 0xd94   :  { %v4632_v44 = vadd.f32 %v2869_v48, %v5360_v59  ;;  %v2871_v46 = vpop.f32.mrb[29].mxu1  ;;  %v4130_v50 = vpop.f32.mrb[29].mxu0  ;;  %v2958_v3 = vadd.f32 %v2940_v60, %v5373_v14 }
 0xd95   :  { %v4633_v54 = vadd.f32 %v2871_v46, %v5368_v22 }
 0xd96   :  { %v3725_v31 = vmul.f32 -1.442695, %v4632_v44 }
 0xd97   :  { %v3726_v56 = vmul.f32 -1.442695, %v4633_v54 }
 0xd98   :  { %4799 = vpow2.f32 %v3725_v31 }
 0xd99   :  { %4801 = vpow2.f32 %v3726_v56 }
 0xda2   :  { %v4800_v39 = vpop.eup %4799 }
 0xda3   :  { %v2952_v45 = vadd.f32 1.0, %v4800_v39  ;;  %v4802_v2 = vpop.eup %4801 }
 0xda4   :  { %v2953_v9 = vadd.f32 1.0, %v4802_v2  ;;  %v3484_v2 = vld [vmem:[%s5613_s4 + $0x18] sm:$0xff] }
 0xda5   :  { %4803 = vrcp.f32 %v2952_v45  ;;  %v3483_v45 = vld [vmem:[%s5613_s4 + $0x10] sm:$0xff] }
 0xdaf   :  { %v4804_v4 = vpop.eup %4803 }
 0xdb0   :  { %v2959_v7 = vmul.f32 %v4804_v4, %v2958_v3 }
 0xdb2   :  { %v2960_v8 = vadd.f32 %v2959_v7, %v5355_v57  ;;  %v4564_v7 = vpack.c.bf16 %v3484_v2, %v3483_v45 }
 0xdb4   :  { %4805 = vtanh.f32 %v2960_v8  ;;  %v3486_v8 = vld [vmem:[%s5613_s4 + $0x28] sm:$0xff] }
 0xdb5   :  { %4807 = vrcp.f32 %v2953_v9 }
 0xdbe   :  { %v4806_v36 = vpop.eup %4805 }
 0xdbf   :  { %v2962_v10 = vsub.f32 %v5442_v63, %v4806_v36  ;;  %v4808_v13 = vpop.eup %4807 }
 0xdc1   :  { %v2963_v15 = vmul.f32 %v4808_v13, %v2962_v10  ;;  %v3488_v10 = vld [vmem:[%s5613_s4 + $0x38] sm:$0xff] }
 0xdc3   :  { %v5464_v62 = vadd.f32 %v4806_v36, %v2963_v15  ;;  %v3487_v36 = vld [vmem:[%s5613_s4 + $0x30] sm:$0xff]  ;;  %v3489_v15 = vld [vmem:[%s5613_s4 + $0x40] sm:$0xff] }
 0xdc4   :  { %v4572_v13 = vpack.c.bf16 %v3488_v10, %v3487_v36 }
 0xdc5   :  { %3727 = vmatmul.mubr.msk.f32.vlgmr.msra.gmra.mrb[30].mxu1 %vm400_vm1, %v5464_v62  ;;  %4140 = vmatmul.mubr.msk.f32.vlgmr.msra.gmra.mrb[30].mxu0 %vm400_vm1, %v5464_v62 }
 0xdc6   :  { %4535 = vmatpush1.bf16.msra.mxu1 %v5317_v12  ;;  %4542 = vmatpush3.bf16.msra.mxu0 %v5296_v33 }
 0xdc7   :  { %4537 = vmatprep.subr.bf16.mxu1 %v5319_v51  ;;  %4543 = vmatprep.subr.bf16.mxu0 %v4924_v21 }
 0xdc8   :  { %3205 = vmatprep.mubr.f32.mxu1 %v4923_v0  ;;  %4150 = vmatprep.mubr.msk.f32.mxu0 %vm4925_vm0, %v4923_v0 }
 0xdca   :  { %4539 = vmatpush1.bf16.msra.mxu1 %v5324_v43  ;;  %4545 = vmatpush3.bf16.msra.mxu0 %v5299_v5 }
 0xdcb   :  { %4554 = vmatprep.subr.bf16.mxu0 %v4924_v21  ;;  %4547 = vmatprep.subr.bf16.mxu1 %v5293_v16 }
 0xe98   :  { %v3038_v57 = vpop.f32.mrb[30].mxu1  ;;  %v3109_v17 = vpop.f32.mrb[30].mxu0 }
 0xe99   :  { %v4634_v18 = vadd.f32 %v3038_v57, %v5360_v59  ;;  %v3040_v19 = vpop.f32.mrb[31].mxu1  ;;  %v4141_v20 = vpop.f32.mrb[31].mxu0  ;;  %v3127_v11 = vadd.f32 %v3109_v17, %v5373_v14  ;;  %v3491_v17 = vld [vmem:[%s5613_s4 + $0x50] sm:$0xff] }
 0xe9a   :  { %v4635_v23 = vadd.f32 %v3040_v19, %v5368_v22  ;;  %v3493_v20 = vld [vmem:[%s5613_s4 + $0x60] sm:$0xff] }
 0xe9b   :  { %v3729_v27 = vmul.f32 -1.442695, %v4634_v18  ;;  %v3492_v18 = vld [vmem:[%s5613_s4 + $0x58] sm:$0xff] }
 0xe9c   :  { %v3730_v24 = vmul.f32 -1.442695, %v4635_v23  ;;  %v4580_v19 = vpack.c.bf16 %v3492_v18, %v3491_v17 }
 0xe9d   :  { %4809 = vpow2.f32 %v3729_v27  ;;  %v3494_v27 = vld [vmem:[%s5613_s4 + $0x68] sm:$0xff] }
 0xe9e   :  { %4811 = vpow2.f32 %v3730_v24  ;;  %v4584_v23 = vpack.c.bf16 %v3494_v27, %v3493_v20  ;;  %v3495_v24 = vld [vmem:[%s5613_s4 + $0x70] sm:$0xff] }
 0xea7   :  { %v4810_v25 = vpop.eup %4809 }
 0xea8   :  { %v3121_v61 = vadd.f32 1.0, %v4810_v25  ;;  %v4812_v38 = vpop.eup %4811  ;;  %v3496_v25 = vld [vmem:[%s5613_s4 + $0x78] sm:$0xff] }
 0xea9   :  { %v3122_v30 = vadd.f32 1.0, %v4812_v38 }
 0xeaa   :  { %4813 = vrcp.f32 %v3121_v61  ;;  %v4588_v61 = vpack.c.bf16 %v3496_v25, %v3495_v24 }
 0xeb4   :  { %v4814_v47 = vpop.eup %4813 }
 0xeb5   :  { %v3128_v16 = vmul.f32 %v4814_v47, %v3127_v11 }
 0xeb7   :  { %v3129_v6 = vadd.f32 %v3128_v16, %v5352_v53  ;;  %v3481_v53 = vld [vmem:[%s5613_s4] sm:$0xff] }
 0xeb9   :  { %4815 = vtanh.f32 %v3129_v6 }
 0xeba   :  { %4817 = vrcp.f32 %v3122_v30 }
 0xec3   :  { %v4816_v34 = vpop.eup %4815 }
 0xec4   :  { %v3131_v35 = vsub.f32 %v5464_v62, %v4816_v34  ;;  %v4818_v37 = vpop.eup %4817 }
 0xec6   :  { %v3132_v40 = vmul.f32 %v4818_v37, %v3131_v35 }
 0xec8   :  { %v5486_v49 = vadd.f32 %v4816_v34, %v3132_v40 }
 0xeca   :  { %3731 = vmatmul.mubr.msk.f32.vlgmr.msra.gmra.mrb[32].mxu1 %vm400_vm1, %v5486_v49  ;;  %4151 = vmatmul.mubr.msk.f32.vlgmr.msra.gmra.mrb[32].mxu0 %vm400_vm1, %v5486_v49 }
 0xecb   :  { %4556 = vmatpush3.bf16.msra.mxu0 %v5296_v33  ;;  %4549 = vmatpush1.bf16.msra.mxu1 %v5317_v12  ;;  %v3482_v33 = vld [vmem:[%s5613_s4 + $0x8] sm:$0xff] }
 0xecc   :  { %4557 = vmatprep.subr.bf16.mxu0 %v4924_v21  ;;  %4551 = vmatprep.subr.bf16.mxu1 %v5319_v51  ;;  %v4560_v21 = vpack.c.bf16 %v3482_v33, %v3481_v53 }
 0xecd   :  { %3374 = vmatprep.mubr.f32.mxu1 %v4923_v0  ;;  %4161 = vmatprep.mubr.msk.f32.mxu0 %vm4925_vm0, %v4923_v0 }
 0xecf   :  { %4559 = vmatpush3.bf16.msra.mxu0 %v5299_v5  ;;  %4553 = vmatpush1.bf16.msra.mxu1 %v5324_v43 }
 0xed0   :  { %4561 = vmatprep.subr.bf16.mxu0 %v4560_v21 }
 0xf9d   :  { %v3207_v12 = vpop.f32.mrb[32].mxu1  ;;  %v3278_v51 = vpop.f32.mrb[32].mxu0 }
 0xf9e   :  { %v4636_v42 = vadd.f32 %v3207_v12, %v5360_v59  ;;  %v3209_v28 = vpop.f32.mrb[33].mxu1  ;;  %v4152_v0 = vpop.f32.mrb[33].mxu0  ;;  %v3296_v60 = vadd.f32 %v3278_v51, %v5373_v14 }
 0xf9f   :  { %v4637_v5 = vadd.f32 %v3209_v28, %v5368_v22 }
 0xfa0   :  { %v3733_v1 = vmul.f32 -1.442695, %v4636_v42 }
 0xfa1   :  { %v3734_v43 = vmul.f32 -1.442695, %v4637_v5 }
 0xfa2   :  { %4819 = vpow2.f32 %v3733_v1 }
 0xfa3   :  { %4821 = vpow2.f32 %v3734_v43 }
 0xfac   :  { %v4820_v29 = vpop.eup %4819 }
 0xfad   :  { %v3290_v55 = vadd.f32 1.0, %v4820_v29  ;;  %v4822_v48 = vpop.eup %4821 }
 0xfae   :  { %v3291_v31 = vadd.f32 1.0, %v4822_v48 }
 0xfaf   :  { %4823 = vrcp.f32 %v3290_v55 }
 0xfb9   :  { %v4824_v44 = vpop.eup %4823 }
 0xfba   :  { %v3297_v46 = vmul.f32 %v4824_v44, %v3296_v60 }
 0xfbc   :  { %v3298_v50 = vadd.f32 %v3297_v46, %v5362_v32  ;;  %v3485_v32 = vld [vmem:[%s5613_s4 + $0x20] sm:$0xff] }
 0xfbd   :  { %v4568_v9 = vpack.c.bf16 %v3486_v8, %v3485_v32 }
 0xfbe   :  { %4825 = vtanh.f32 %v3298_v50 }
 0xfbf   :  { %4827 = vrcp.f32 %v3291_v31 }
 0xfc8   :  { %v4826_v54 = vpop.eup %4825 }
 0xfc9   :  { %v3300_v56 = vsub.f32 %v5486_v49, %v4826_v54  ;;  %v4828_v39 = vpop.eup %4827 }
 0xfcb   :  { %v3301_v3 = vmul.f32 %v4828_v39, %v3300_v56 }
 0xfcd   :  { %v5518_v4 = vadd.f32 %v4826_v54, %v3301_v3 }
 0xfcf   :  { %3735 = vmatmul.mubr.msk.f32.vlgmr.msra.gmra.mrb[34].mxu1 %vm400_vm1, %v5518_v4  ;;  %4162 = vmatmul.mubr.msk.f32.vlgmr.msra.gmra.mrb[34].mxu0 %vm400_vm1, %v5518_v4 }
 0xfd0   :  { %4563 = vmatpush3.bf16.msra.mxu0 %v4560_v21  ;;  %4196 = vmatprep.mubr.f32.mxu0 %v5376_v26  ;;  %v3490_v26 = vld [vmem:[%s5613_s4 + $0x48] sm:$0xff] }
 0xfd1   :  { %4565 = vmatprep.subr.bf16.mxu0 %v4564_v7  ;;  %v4576_v57 = vpack.c.bf16 %v3490_v26, %v3489_v15 }
 0xfd4   :  { %4567 = vmatpush3.bf16.msra.mxu0 %v4564_v7 }
 0xfd5   :  { %4569 = vmatprep.subr.bf16.mxu0 %v4568_v9 }
 0xfd8   :  { %4571 = vmatpush3.bf16.msra.mxu0 %v4568_v9 }
 0xfd9   :  { %4573 = vmatprep.subr.bf16.mxu0 %v4572_v13 }
 0xfdc   :  { %4575 = vmatpush3.bf16.msra.mxu0 %v4572_v13 }
 0xfdd   :  { %4577 = vmatprep.subr.bf16.mxu0 %v4576_v57 }
 0xfe0   :  { %4579 = vmatpush3.bf16.msra.mxu0 %v4576_v57 }
 0xfe1   :  { %4581 = vmatprep.subr.bf16.mxu0 %v4580_v19 }
 0xfe4   :  { %4583 = vmatpush3.bf16.msra.mxu0 %v4580_v19 }
 0xfe5   :  { %4585 = vmatprep.subr.bf16.mxu0 %v4584_v23 }
 0xfe8   :  { %4587 = vmatpush3.bf16.msra.mxu0 %v4584_v23 }
 0xfe9   :  { %4589 = vmatprep.subr.bf16.mxu0 %v4588_v61 }
 0xfec   :  { %4591 = vmatpush3.bf16.msra.mxu0 %v4588_v61 }
 0xfef   :  { %4197 = vmatmul.mubr.f32.vlgmr.msra.gmra.mrb[36].mxu0 %v5398_v52 }
 0xff0   :  { %4199 = vmatprep.mubr.f32.mxu0 %v5420_v41 }
 0xff3   :  { %4200 = vmatmul.mubr.f32.gmra.mrb[38].mxu0 %v5442_v63 }
 0xff4   :  { %4202 = vmatprep.mubr.f32.mxu0 %v5464_v62 }
 0xff7   :  { %4203 = vmatmul.mubr.f32.gmra.mrb[40].mxu0 %v5486_v49 }
 0xff8   :  { %4205 = vmatprep.mubr.f32.mxu0 %v5518_v4 }
0x10a2   :  { %v3376_v38 = vpop.f32.mrb[34].mxu1  ;;  %v3447_v11 = vpop.f32.mrb[34].mxu0 }
0x10a3   :  { %v4638_v47 = vadd.f32 %v3376_v38, %v5360_v59  ;;  %v3378_v16 = vpop.f32.mrb[35].mxu1  ;;  %v4163_v6 = vpop.f32.mrb[35].mxu0  ;;  %v3465_v62 = vadd.f32 %v3447_v11, %v5373_v14  ;;  %v5573_v59 = vld [vmem:[%s5614_s5] ss:$0 sm:$0xff] }
0x10a4   :  { %v4639_v52 = vadd.f32 %v3378_v16, %v5368_v22 }
0x10a5   :  { %v3737_v30 = vmul.f32 -1.442695, %v4638_v47 }
0x10a6   :  { %v3738_v34 = vmul.f32 -1.442695, %v4639_v52 }
0x10a7   :  { %4829 = vpow2.f32 %v3737_v30 }
0x10a8   :  { %4831 = vpow2.f32 %v3738_v34 }
0x10b1   :  { %v4830_v41 = vpop.eup %4829 }
0x10b2   :  { %v3459_v35 = vadd.f32 1.0, %v4830_v41  ;;  %v4832_v63 = vpop.eup %4831 }
0x10b3   :  { %v3460_v53 = vadd.f32 1.0, %v4832_v63 }
0x10b4   :  { %4833 = vrcp.f32 %v3459_v35 }
0x10be   :  { %v4834_v37 = vpop.eup %4833 }
0x10bf   :  { %v3466_v40 = vmul.f32 %v4834_v37, %v3465_v62 }
0x10c1   :  { %v3467_v49 = vadd.f32 %v3466_v40, %v5357_v58 }
0x10c2   :  { %v4198_v33 = vpop.f32.mrb[36].mxu0 }
0x10c3   :  { %4835 = vtanh.f32 %v3467_v49  ;;  %v3576_v22 = vadd.f32 %v4198_v33, %v5573_v59  ;;  %v3570_v21 = vpop.f32.mrb[37].mxu0 }
0x10c4   :  { %v3571_v12 = vadd.f32 %v5573_v59, %v3570_v21  ;;  %4837 = vrcp.f32 %v3460_v53 }
0x10c5   :  { %v3741_v51 = vmul.f32 -1.442695, %v3576_v22 }
0x10c6   :  { %v3740_v14 = vmul.f32 -1.442695, %v3571_v12  ;;  %v4201_v42 = vpop.f32.mrb[38].mxu0 }
0x10c7   :  { %4839 = vpow2.f32 %v3741_v51  ;;  %v3586_v28 = vadd.f32 %v4201_v42, %v5573_v59  ;;  %v3580_v0 = vpop.f32.mrb[39].mxu0 }
0x10c8   :  { %4841 = vpow2.f32 %v3740_v14  ;;  %v3581_v1 = vadd.f32 %v5573_v59, %v3580_v0 }
0x10c9   :  { %v3743_v58 = vmul.f32 -1.442695, %v3586_v28 }
0x10ca   :  { %v3742_v5 = vmul.f32 -1.442695, %v3581_v1  ;;  %v4204_v43 = vpop.f32.mrb[40].mxu0 }
0x10cb   :  { %4843 = vpow2.f32 %v3743_v58  ;;  %v3596_v29 = vadd.f32 %v4204_v43, %v5573_v59  ;;  %v3590_v55 = vpop.f32.mrb[41].mxu0 }
0x10cc   :  { %4845 = vpow2.f32 %v3742_v5  ;;  %v3591_v48 = vadd.f32 %v5573_v59, %v3590_v55 }
0x10cd   :  { %v4836_v60 = vpop.eup %4835  ;;  %v3745_v44 = vmul.f32 -1.442695, %v3596_v29 }
0x10ce   :  { %v3744_v46 = vmul.f32 -1.442695, %v3591_v48  ;;  %v3469_v50 = vsub.f32 %v5518_v4, %v4836_v60  ;;  %v4838_v31 = vpop.eup %4837 }
0x10cf   :  { %4847 = vpow2.f32 %v3745_v44 }
0x10d0   :  { %4849 = vpow2.f32 %v3744_v46  ;;  %v3470_v54 = vmul.f32 %v4838_v31, %v3469_v50 }
0x10d1   :  { %v4840_v56 = vpop.eup %4839 }
0x10d2   :  { %v4842_v39 = vpop.eup %4841  ;;  %v3634_v45 = vadd.f32 1.0, %v4840_v56  ;;  %v3471_v2 = vadd.f32 %v4836_v60, %v3470_v54 }
0x10d3   :  { %v3633_v3 = vadd.f32 1.0, %v4842_v39 }
0x10d4   :  { %4851 = vrcp.f32 %v3634_v45  ;;  %4206 = vmatmul.mubr.f32.gmra.mrb[42].mxu0 %v3471_v2 }
0x10d5   :  { %v4844_v7 = vpop.eup %4843  ;;  %4853 = vrcp.f32 %v3633_v3 }
0x10d6   :  { %v4846_v32 = vpop.eup %4845  ;;  %v3636_v8 = vadd.f32 1.0, %v4844_v7 }
0x10d7   :  { %v3635_v9 = vadd.f32 1.0, %v4846_v32 }
0x10d8   :  { %4855 = vrcp.f32 %v3636_v8 }
0x10d9   :  { %v4848_v36 = vpop.eup %4847  ;;  %4857 = vrcp.f32 %v3635_v9 }
0x10da   :  { %v4850_v4 = vpop.eup %4849  ;;  %v3638_v10 = vadd.f32 1.0, %v4848_v36 }
0x10db   :  { %v3637_v13 = vadd.f32 1.0, %v4850_v4 }
0x10dc   :  { %4859 = vrcp.f32 %v3638_v10 }
0x10dd   :  { %4861 = vrcp.f32 %v3637_v13 }
0x10de   :  { %v4852_v15 = vpop.eup %4851 }
0x10df   :  { %v4854_v26 = vpop.eup %4853  ;;  %3658 = vst [vmem:[%s5615_s6 + $0x8] sm:$0xff] %v4852_v15 }
0x10e0   :  { %3657 = vst [vmem:[%s5615_s6] sm:$0xff] %v4854_v26 }
0x10e2   :  { %v4856_v57 = vpop.eup %4855 }
0x10e3   :  { %v4858_v17 = vpop.eup %4857  ;;  %3660 = vst [vmem:[%s5615_s6 + $0x18] sm:$0xff] %v4856_v57 }
0x10e4   :  { %3659 = vst [vmem:[%s5615_s6 + $0x10] sm:$0xff] %v4858_v17 }
0x10e6   :  { %v4860_v18 = vpop.eup %4859 }
0x10e7   :  { %v4862_v19 = vpop.eup %4861  ;;  %3662 = vst [vmem:[%s5615_s6 + $0x28] sm:$0xff] %v4860_v18 }
0x10e8   :  { %3661 = vst [vmem:[%s5615_s6 + $0x20] sm:$0xff] %v4862_v19 }
0x11a7   :  { %v4207_v20 = vpop.f32.mrb[42].mxu0 }
0x11a8   :  { %v3606_v27 = vadd.f32 %v4207_v20, %v5573_v59  ;;  %v3600_v23 = vpop.f32.mrb[43].mxu0 }
0x11a9   :  { %v3601_v24 = vadd.f32 %v5573_v59, %v3600_v23 }
0x11aa   :  { %v3747_v25 = vmul.f32 -1.442695, %v3606_v27 }
0x11ab   :  { %v3746_v61 = vmul.f32 -1.442695, %v3601_v24 }
0x11ac   :  { %4863 = vpow2.f32 %v3747_v25 }
0x11ad   :  { %4865 = vpow2.f32 %v3746_v61 }
0x11b6   :  { %v4864_v38 = vpop.eup %4863 }
0x11b7   :  { %v4866_v11 = vpop.eup %4865  ;;  %v3640_v47 = vadd.f32 1.0, %v4864_v38 }
0x11b8   :  { %v3639_v16 = vadd.f32 1.0, %v4866_v11 }
0x11b9   :  { %4867 = vrcp.f32 %v3640_v47 }
0x11ba   :  { %4869 = vrcp.f32 %v3639_v16 }
0x11c3   :  { %v4868_v6 = vpop.eup %4867 }
0x11c4   :  { %v4870_v30 = vpop.eup %4869  ;;  %3664 = vst [vmem:[%s5615_s6 + $0x38] sm:$0xff] %v4868_v6 }
0x11c5   :  { %3663 = vst [vmem:[%s5615_s6 + $0x30] sm:$0xff] %v4870_v30 }
0x11c6   :  { %3669 = vsyncpa [#allocation5], 1 }
0x11c7   :  { %3670 = vsyncpa [#allocation7], 1 }

</bundles_post_ra>
